<compile_context>
chip_gen: v5e
topology: v5e:2x2
jax: 0.10.0
libtpu: 0.0.40
codegen_flags: <defaults>
</compile_context>

<pallas_src>
import functools

import jax
import jax.numpy as jnp
from jax.experimental import pallas as pl
from jax.experimental.pallas import tpu as pltpu

NEG_SLOPE = 0.2   # LeakyReLU(0.2)


def _leaky(x):
    return jnp.where(x > 0, x, NEG_SLOPE * x)


def _shifted_taps(x, col, *, dil, W):
    """The 9 zero-padded 'same' 3x3 taps of x at dilation `dil`, as values.

    x   : (C, P) f32, pixels flattened row-major on the lane axis (P = H*W).
    col : (1, P) int32 pixel-column indices.

    A spatial shift (dy, dx) is the single lane shift dy*W + dx on the flat
    pixel axis of a zero-extended copy of x: shifts that run off the top or
    bottom of the image land in the zero extension, and shifts that wrap across
    a row boundary are killed with a per-column mask.  Taps come back in
    (ky, kx) row-major order to match the im2col weight layout.
    """
    C, P = x.shape
    kp = dil * (W + 1)                                  # max |dy*W + dx|
    z = jnp.zeros((C, kp), x.dtype)
    xp = jnp.concatenate([z, x, z], axis=-1)            # (C, P + 2*kp)
    ok_neg = col >= dil                                 # c - dil stays in-row
    ok_pos = col < (W - dil)                            # c + dil stays in-row
    taps = []
    for dy in (-dil, 0, dil):
        for dx in (-dil, 0, dil):
            s = dy * W + dx
            t = x if s == 0 else xp[:, kp + s: kp + s + P]
            if dx > 0:
                t = jnp.where(ok_pos, t, 0.0)
            elif dx < 0:
                t = jnp.where(ok_neg, t, 0.0)
            taps.append(t)
    return taps


def _im2col(x, col, *, dil, W):
    """(9*C, P) bf16 patch matrix, rows tap-major / channel-minor."""
    taps = _shifted_taps(x, col, dil=dil, W=W)
    return jnp.concatenate(taps, axis=0).astype(jnp.bfloat16)


def _conv(patches, w_ref, b_ref):
    """(Cout, 9*Cin)bf16 x (9*Cin, P)bf16 -> (Cout, P) f32, + bias (Cout, 1)."""
    return jnp.dot(w_ref[...], patches,
                   preferred_element_type=jnp.float32) + b_ref[...]


def dual_path_kernel(x_ref, col_ref,
                     fw_ref, fb_ref,
                     d1w_ref, d1b_ref, d2w_ref, d2b_ref, d3w_ref, d3b_ref,
                     hw_ref, hb_ref,
                     dnw_ref, dnb_ref,
                     g1w_ref, g1b_ref, g2w_ref, g2b_ref,
                     fuw_ref, fub_ref,
                     o_ref, *, W):
    col = col_ref[...]                                   # (1, P) int32
    x = x_ref[0]                                         # (Cin_pad, P) f32

    # features = LeakyReLU(Conv2d(cin, C, 3, padding=1))
    feat = _leaky(_conv(_im2col(x, col, dil=1, W=W), fw_ref, fb_ref))  # (C, P)

    # dilation-1 patches of `feat` feed BOTH the first chain conv and the
    # ResidualDenoiser conv (hoisted: the conv itself is gate-independent).
    pf = _im2col(feat, col, dil=1, W=W)
    dn_conv = _conv(pf, dnw_ref, dnb_ref)

    # detail path 1/2: DilatedConvChain (dilations 1, 2, 4) + residual
    d = _leaky(_conv(pf, d1w_ref, d1b_ref))
    d = _leaky(_conv(_im2col(d, col, dil=2, W=W), d2w_ref, d2b_ref))
    d = _leaky(_conv(_im2col(d, col, dil=4, W=W), d3w_ref, d3b_ref)) + feat

    # detail path 2/2: HighFrequencyAttention
    #   high = d - avg_pool3x3(d)  (stride 1, pad 1, count_include_pad=True)
    box = None
    for t in _shifted_taps(d, col, dil=1, W=W):
        box = t if box is None else box + t
    high = d - box * (1.0 / 9.0)
    attn = jax.nn.sigmoid(
        _conv(_im2col(high, col, dil=1, W=W), hw_ref, hb_ref))
    detail = d * attn

    # AdaptiveDenoiseGate: GAP -> 1x1 -> ReLU -> 1x1 -> sigmoid (per channel)
    pooled = jnp.mean(feat, axis=1, keepdims=True)                     # (C, 1)
    hid = jnp.maximum(
        jnp.dot(g1w_ref[...], pooled, preferred_element_type=jnp.float32)
        + g1b_ref[...], 0.0)
    gate = jax.nn.sigmoid(
        jnp.dot(g2w_ref[...], hid, preferred_element_type=jnp.float32)
        + g2b_ref[...])                                                # (C, 1)

    # ResidualDenoiser: feat + gate * conv3x3(feat)
    denoise = feat + gate * dn_conv

    # DynamicFusion: per-pixel softmax over the 3 logits of a 1x1 conv on
    # concat([detail, denoise, feat]) -- one lane-dense (3, 3C) x (3C, P) dot.
    branches = jnp.concatenate([detail, denoise, feat],
                               axis=0).astype(jnp.bfloat16)            # (3C, P)
    logits = jnp.dot(fuw_ref[...], branches,
                     preferred_element_type=jnp.float32) + fub_ref[...]  # (3, P)
    l0, l1, l2 = logits[0:1, :], logits[1:2, :], logits[2:3, :]
    m = jnp.maximum(jnp.maximum(l0, l1), l2)
    e0, e1, e2 = jnp.exp(l0 - m), jnp.exp(l1 - m), jnp.exp(l2 - m)
    inv = 1.0 / (e0 + e1 + e2)        # TODO(synk): pl.reciprocal(approx=True)
    o_ref[0] = (e0 * detail + e1 * denoise + e2 * feat) * inv


# ---------------------------------------------------------------------------
# Wrapper (layout plumbing only: reshapes, channel pad, weight re-layout)
# ---------------------------------------------------------------------------
def _conv_w_to_kernel(w, cin_pad):
    """PyTorch (Cout, Cin, 3, 3) -> (Cout, 9*cin_pad) bf16, tap-major/ch-minor."""
    cout, cin = w.shape[0], w.shape[1]
    w = jnp.transpose(w, (0, 2, 3, 1))                       # (Cout, 3, 3, Cin)
    w = jnp.pad(w, ((0, 0), (0, 0), (0, 0), (0, cin_pad - cin)))
    return w.reshape(cout, 9 * cin_pad).astype(jnp.bfloat16)


def _bias_col(b):
    return b.reshape(-1, 1).astype(jnp.float32)


def dual_path_block(x_nchw, params):
    """DualPathBlock forward. x_nchw: (N, Cin, H, W) -> (N, Cout, H, W)."""
    N, Cin, H, W = x_nchw.shape
    C = params['feat_b'].shape[0]
    P = H * W
    cin_pad = ((Cin + 7) // 8) * 8        # keep sublane-axis concats 8-aligned

    # NCHW already has channels leading: flattening HxW gives the kernel's
    # channels-on-sublanes / pixels-on-lanes layout directly (no transpose).
    x = jnp.pad(x_nchw.astype(jnp.float32),
                ((0, 0), (0, cin_pad - Cin), (0, 0), (0, 0)))
    x = x.reshape(N, cin_pad, P)

    # column index of every flattened pixel (for the in-row validity masks)
    col = jnp.tile(jnp.arange(W, dtype=jnp.int32), H).reshape(1, P)

    w_list = [
        _conv_w_to_kernel(params['feat_w'], cin_pad), _bias_col(params['feat_b']),
        _conv_w_to_kernel(params['d1_w'], C), _bias_col(params['d1_b']),
        _conv_w_to_kernel(params['d2_w'], C), _bias_col(params['d2_b']),
        _conv_w_to_kernel(params['d3_w'], C), _bias_col(params['d3_b']),
        _conv_w_to_kernel(params['hfa_w'], C), _bias_col(params['hfa_b']),
        _conv_w_to_kernel(params['dn_w'], C), _bias_col(params['dn_b']),
        params['g_w1'].astype(jnp.float32), _bias_col(params['g_b1']),
        params['g_w2'].astype(jnp.float32), _bias_col(params['g_b2']),
        params['fuse_w'].astype(jnp.bfloat16), _bias_col(params['fuse_b']),
    ]

    kernel = functools.partial(dual_path_kernel, W=W)

    out = pl.pallas_call(
        kernel,
        grid=(N,),
        in_specs=[pl.BlockSpec((1, cin_pad, P), lambda n: (n, 0, 0)),
                  pl.BlockSpec((1, P), lambda n: (0, 0))]
                + [pl.BlockSpec(w.shape, lambda n: (0, 0)) for w in w_list],
        out_specs=pl.BlockSpec((1, C, P), lambda n: (n, 0, 0)),
        out_shape=jax.ShapeDtypeStruct((N, C, P), jnp.float32),
        compiler_params=pltpu.CompilerParams(
            dimension_semantics=("parallel",)),
    )(x, col, *w_list)

    return out.reshape(N, C, H, W)        # pure reshape, no transpose


# ---------------------------------------------------------------------------
# Deterministic synthetic parameters (PyTorch-native layouts)
# ---------------------------------------------------------------------------
def init_params(key, c_in, c_out):
    ks = jax.random.split(key, 18)
    cm = max(c_out // 2, 1)

    def convw(k, cout, cin):
        return jax.random.normal(k, (cout, cin, 3, 3), jnp.float32) * 0.1

    def bias(k, c):
        return jax.random.normal(k, (c,), jnp.float32) * 0.01

    return {
        'feat_w': convw(ks[0], c_out, c_in),   'feat_b': bias(ks[1], c_out),
        'd1_w':   convw(ks[2], c_out, c_out),  'd1_b':   bias(ks[3], c_out),
        'd2_w':   convw(ks[4], c_out, c_out),  'd2_b':   bias(ks[5], c_out),
        'd3_w':   convw(ks[6], c_out, c_out),  'd3_b':   bias(ks[7], c_out),
        'hfa_w':  convw(ks[8], c_out, c_out),  'hfa_b':  bias(ks[9], c_out),
        'dn_w':   convw(ks[10], c_out, c_out), 'dn_b':   bias(ks[11], c_out),
        'g_w1':   jax.random.normal(ks[12], (cm, c_out), jnp.float32) * 0.1,
        'g_b1':   bias(ks[13], cm),
        'g_w2':   jax.random.normal(ks[14], (c_out, cm), jnp.float32) * 0.1,
        'g_b2':   bias(ks[15], c_out),
        # DynamicFusion 1x1 conv on concat([detail, denoise, feat]) -> 3 logits
        'fuse_w': jax.random.normal(ks[16], (3, 3 * c_out), jnp.float32) * 0.1,
        'fuse_b': bias(ks[17], 3),
    }


if __name__ == "__main__":
    key = jax.random.PRNGKey(0)
    kx, kp = jax.random.split(key)

    in_channels, out_channels = 4, 8
    x = jax.random.normal(kx, (2, in_channels, 16, 16), jnp.float32)   # NCHW
    params = init_params(kp, in_channels, out_channels)

    out = jax.jit(dual_path_block)(x, params)
    jax.block_until_ready(out)
    assert out.shape == (2, out_channels, 16, 16), out.shape
    assert out.dtype == jnp.float32
    print("KERNEL_OK")
</pallas_src>

<mosaic_0001>
module attributes {stable_mosaic.version = 11 : i64} {
  func.func @dual_path_kernel(%arg0: i32, %arg1: memref<1x8x256xf32, #tpu.memory_space<vmem>>, %arg2: memref<1x256xi32, #tpu.memory_space<vmem>>, %arg3: memref<8x72xbf16, #tpu.memory_space<vmem>>, %arg4: memref<8x1xf32, #tpu.memory_space<vmem>>, %arg5: memref<8x72xbf16, #tpu.memory_space<vmem>>, %arg6: memref<8x1xf32, #tpu.memory_space<vmem>>, %arg7: memref<8x72xbf16, #tpu.memory_space<vmem>>, %arg8: memref<8x1xf32, #tpu.memory_space<vmem>>, %arg9: memref<8x72xbf16, #tpu.memory_space<vmem>>, %arg10: memref<8x1xf32, #tpu.memory_space<vmem>>, %arg11: memref<8x72xbf16, #tpu.memory_space<vmem>>, %arg12: memref<8x1xf32, #tpu.memory_space<vmem>>, %arg13: memref<8x72xbf16, #tpu.memory_space<vmem>>, %arg14: memref<8x1xf32, #tpu.memory_space<vmem>>, %arg15: memref<4x8xf32, #tpu.memory_space<vmem>>, %arg16: memref<4x1xf32, #tpu.memory_space<vmem>>, %arg17: memref<8x4xf32, #tpu.memory_space<vmem>>, %arg18: memref<8x1xf32, #tpu.memory_space<vmem>>, %arg19: memref<3x24xbf16, #tpu.memory_space<vmem>>, %arg20: memref<3x1xf32, #tpu.memory_space<vmem>>, %arg21: memref<1x8x256xf32, #tpu.memory_space<vmem>>) attributes {dimension_semantics = [#tpu.dimension_semantics<parallel>], iteration_bounds = array<i64: 2>, scalar_prefetch = 0 : i64, scratch_operands = 0 : i64, tpu.core_type = #tpu.core_type<tc>, window_params = [{transform_indices = @transform_0, window_bounds = array<i64: 1, 8, 256>}, {pipeline_mode = #tpu.pipeline_mode<synchronous>, transform_indices = @transform_1, window_bounds = array<i64: 1, 256>}, {pipeline_mode = #tpu.pipeline_mode<synchronous>, transform_indices = @transform_2, window_bounds = array<i64: 8, 72>}, {pipeline_mode = #tpu.pipeline_mode<synchronous>, transform_indices = @transform_3, window_bounds = array<i64: 8, 1>}, {pipeline_mode = #tpu.pipeline_mode<synchronous>, transform_indices = @transform_4, window_bounds = array<i64: 8, 72>}, {pipeline_mode = #tpu.pipeline_mode<synchronous>, transform_indices = @transform_5, window_bounds = array<i64: 8, 1>}, {pipeline_mode = #tpu.pipeline_mode<synchronous>, transform_indices = @transform_6, window_bounds = array<i64: 8, 72>}, {pipeline_mode = #tpu.pipeline_mode<synchronous>, transform_indices = @transform_7, window_bounds = array<i64: 8, 1>}, {pipeline_mode = #tpu.pipeline_mode<synchronous>, transform_indices = @transform_8, window_bounds = array<i64: 8, 72>}, {pipeline_mode = #tpu.pipeline_mode<synchronous>, transform_indices = @transform_9, window_bounds = array<i64: 8, 1>}, {pipeline_mode = #tpu.pipeline_mode<synchronous>, transform_indices = @transform_10, window_bounds = array<i64: 8, 72>}, {pipeline_mode = #tpu.pipeline_mode<synchronous>, transform_indices = @transform_11, window_bounds = array<i64: 8, 1>}, {pipeline_mode = #tpu.pipeline_mode<synchronous>, transform_indices = @transform_12, window_bounds = array<i64: 8, 72>}, {pipeline_mode = #tpu.pipeline_mode<synchronous>, transform_indices = @transform_13, window_bounds = array<i64: 8, 1>}, {pipeline_mode = #tpu.pipeline_mode<synchronous>, transform_indices = @transform_14, window_bounds = array<i64: 4, 8>}, {pipeline_mode = #tpu.pipeline_mode<synchronous>, transform_indices = @transform_15, window_bounds = array<i64: 4, 1>}, {pipeline_mode = #tpu.pipeline_mode<synchronous>, transform_indices = @transform_16, window_bounds = array<i64: 8, 4>}, {pipeline_mode = #tpu.pipeline_mode<synchronous>, transform_indices = @transform_17, window_bounds = array<i64: 8, 1>}, {pipeline_mode = #tpu.pipeline_mode<synchronous>, transform_indices = @transform_18, window_bounds = array<i64: 3, 24>}, {pipeline_mode = #tpu.pipeline_mode<synchronous>, transform_indices = @transform_19, window_bounds = array<i64: 3, 1>}, {transform_indices = @transform_20, window_bounds = array<i64: 1, 8, 256>}]} {
    %c0 = arith.constant 0 : index
    %c0_0 = arith.constant 0 : index
    %0 = vector.load %arg2[%c0, %c0_0] : memref<1x256xi32, #tpu.memory_space<vmem>>, vector<1x256xi32>
    %c0_1 = arith.constant 0 : index
    %c0_2 = arith.constant 0 : index
    %c0_3 = arith.constant 0 : index
    %1 = vector.load %arg1[%c0_1, %c0_2, %c0_3] : memref<1x8x256xf32, #tpu.memory_space<vmem>>, vector<1x8x256xf32>
    %2 = vector.shape_cast %1 : vector<1x8x256xf32> to vector<8x256xf32>
    %cst = arith.constant 0.000000e+00 : f32
    %3 = vector.broadcast %cst : f32 to vector<8x17xf32>
    %4 = tpu.concatenate %3, %2, %3 in 1 : vector<8x17xf32>, vector<8x256xf32>, vector<8x17xf32> -> vector<8x290xf32>
    %c1_i32 = arith.constant 1 : i32
    %5 = vector.broadcast %c1_i32 : i32 to vector<1x256xi32>
    %6 = arith.cmpi sge, %0, %5 : vector<1x256xi32>
    %c15_i32 = arith.constant 15 : i32
    %7 = vector.broadcast %c15_i32 : i32 to vector<1x256xi32>
    %8 = arith.cmpi slt, %0, %7 : vector<1x256xi32>
    %9 = vector.extract_strided_slice %4 {offsets = [0, 0], sizes = [8, 256], strides = [1, 1]} : vector<8x290xf32> to vector<8x256xf32>
    %cst_4 = arith.constant 0.000000e+00 : f32
    %10 = vector.shape_cast %6 : vector<1x256xi1> to vector<1x256xi1>
    %11 = vector.broadcast %10 : vector<1x256xi1> to vector<8x256xi1>
    %12 = vector.broadcast %cst_4 : f32 to vector<8x256xf32>
    %13 = arith.select %11, %9, %12 : vector<8x256xi1>, vector<8x256xf32>
    %14 = vector.extract_strided_slice %4 {offsets = [0, 1], sizes = [8, 256], strides = [1, 1]} : vector<8x290xf32> to vector<8x256xf32>
    %15 = vector.extract_strided_slice %4 {offsets = [0, 2], sizes = [8, 256], strides = [1, 1]} : vector<8x290xf32> to vector<8x256xf32>
    %cst_5 = arith.constant 0.000000e+00 : f32
    %16 = vector.shape_cast %8 : vector<1x256xi1> to vector<1x256xi1>
    %17 = vector.broadcast %16 : vector<1x256xi1> to vector<8x256xi1>
    %18 = vector.broadcast %cst_5 : f32 to vector<8x256xf32>
    %19 = arith.select %17, %15, %18 : vector<8x256xi1>, vector<8x256xf32>
    %20 = vector.extract_strided_slice %4 {offsets = [0, 16], sizes = [8, 256], strides = [1, 1]} : vector<8x290xf32> to vector<8x256xf32>
    %cst_6 = arith.constant 0.000000e+00 : f32
    %21 = vector.shape_cast %6 : vector<1x256xi1> to vector<1x256xi1>
    %22 = vector.broadcast %21 : vector<1x256xi1> to vector<8x256xi1>
    %23 = vector.broadcast %cst_6 : f32 to vector<8x256xf32>
    %24 = arith.select %22, %20, %23 : vector<8x256xi1>, vector<8x256xf32>
    %25 = vector.extract_strided_slice %4 {offsets = [0, 18], sizes = [8, 256], strides = [1, 1]} : vector<8x290xf32> to vector<8x256xf32>
    %cst_7 = arith.constant 0.000000e+00 : f32
    %26 = vector.shape_cast %8 : vector<1x256xi1> to vector<1x256xi1>
    %27 = vector.broadcast %26 : vector<1x256xi1> to vector<8x256xi1>
    %28 = vector.broadcast %cst_7 : f32 to vector<8x256xf32>
    %29 = arith.select %27, %25, %28 : vector<8x256xi1>, vector<8x256xf32>
    %30 = vector.extract_strided_slice %4 {offsets = [0, 32], sizes = [8, 256], strides = [1, 1]} : vector<8x290xf32> to vector<8x256xf32>
    %cst_8 = arith.constant 0.000000e+00 : f32
    %31 = vector.shape_cast %6 : vector<1x256xi1> to vector<1x256xi1>
    %32 = vector.broadcast %31 : vector<1x256xi1> to vector<8x256xi1>
    %33 = vector.broadcast %cst_8 : f32 to vector<8x256xf32>
    %34 = arith.select %32, %30, %33 : vector<8x256xi1>, vector<8x256xf32>
    %35 = vector.extract_strided_slice %4 {offsets = [0, 33], sizes = [8, 256], strides = [1, 1]} : vector<8x290xf32> to vector<8x256xf32>
    %36 = vector.extract_strided_slice %4 {offsets = [0, 34], sizes = [8, 256], strides = [1, 1]} : vector<8x290xf32> to vector<8x256xf32>
    %cst_9 = arith.constant 0.000000e+00 : f32
    %37 = vector.shape_cast %8 : vector<1x256xi1> to vector<1x256xi1>
    %38 = vector.broadcast %37 : vector<1x256xi1> to vector<8x256xi1>
    %39 = vector.broadcast %cst_9 : f32 to vector<8x256xf32>
    %40 = arith.select %38, %36, %39 : vector<8x256xi1>, vector<8x256xf32>
    %41 = tpu.concatenate %13, %14, %19, %24, %2, %29, %34, %35, %40 in 0 : vector<8x256xf32>, vector<8x256xf32>, vector<8x256xf32>, vector<8x256xf32>, vector<8x256xf32>, vector<8x256xf32>, vector<8x256xf32>, vector<8x256xf32>, vector<8x256xf32> -> vector<72x256xf32>
    %42 = arith.truncf %41 : vector<72x256xf32> to vector<72x256xbf16>
    %c0_10 = arith.constant 0 : index
    %c0_11 = arith.constant 0 : index
    %43 = vector.load %arg3[%c0_10, %c0_11] : memref<8x72xbf16, #tpu.memory_space<vmem>>, vector<8x72xbf16>
    %cst_12 = arith.constant dense<0.000000e+00> : vector<8x256xf32>
    %44 = tpu.matmul %43, %42, %cst_12 {dimension_numbers = #tpu.dot_dimension_numbers<[1], [0], [0], [1], [0, 0, 1, 1], [], []>} : vector<8x72xbf16>, vector<72x256xbf16>, vector<8x256xf32> -> vector<8x256xf32>
    %c0_13 = arith.constant 0 : index
    %c0_14 = arith.constant 0 : index
    %45 = vector.load %arg4[%c0_13, %c0_14] : memref<8x1xf32, #tpu.memory_space<vmem>>, vector<8x1xf32>
    %46 = vector.broadcast %45 : vector<8x1xf32> to vector<8x256xf32>
    %47 = arith.addf %44, %46 : vector<8x256xf32>
    %cst_15 = arith.constant 0.000000e+00 : f32
    %48 = vector.broadcast %cst_15 : f32 to vector<8x256xf32>
    %49 = arith.cmpf ogt, %47, %48 : vector<8x256xf32>
    %cst_16 = arith.constant 2.000000e-01 : f32
    %50 = vector.broadcast %cst_16 : f32 to vector<8x256xf32>
    %51 = arith.mulf %50, %47 : vector<8x256xf32>
    %52 = arith.select %49, %47, %51 : vector<8x256xi1>, vector<8x256xf32>
    %cst_17 = arith.constant 0.000000e+00 : f32
    %53 = vector.broadcast %cst_17 : f32 to vector<8x17xf32>
    %54 = tpu.concatenate %53, %52, %53 in 1 : vector<8x17xf32>, vector<8x256xf32>, vector<8x17xf32> -> vector<8x290xf32>
    %c1_i32_18 = arith.constant 1 : i32
    %55 = vector.broadcast %c1_i32_18 : i32 to vector<1x256xi32>
    %56 = arith.cmpi sge, %0, %55 : vector<1x256xi32>
    %c15_i32_19 = arith.constant 15 : i32
    %57 = vector.broadcast %c15_i32_19 : i32 to vector<1x256xi32>
    %58 = arith.cmpi slt, %0, %57 : vector<1x256xi32>
    %59 = vector.extract_strided_slice %54 {offsets = [0, 0], sizes = [8, 256], strides = [1, 1]} : vector<8x290xf32> to vector<8x256xf32>
    %cst_20 = arith.constant 0.000000e+00 : f32
    %60 = vector.shape_cast %56 : vector<1x256xi1> to vector<1x256xi1>
    %61 = vector.broadcast %60 : vector<1x256xi1> to vector<8x256xi1>
    %62 = vector.broadcast %cst_20 : f32 to vector<8x256xf32>
    %63 = arith.select %61, %59, %62 : vector<8x256xi1>, vector<8x256xf32>
    %64 = vector.extract_strided_slice %54 {offsets = [0, 1], sizes = [8, 256], strides = [1, 1]} : vector<8x290xf32> to vector<8x256xf32>
    %65 = vector.extract_strided_slice %54 {offsets = [0, 2], sizes = [8, 256], strides = [1, 1]} : vector<8x290xf32> to vector<8x256xf32>
    %cst_21 = arith.constant 0.000000e+00 : f32
    %66 = vector.shape_cast %58 : vector<1x256xi1> to vector<1x256xi1>
    %67 = vector.broadcast %66 : vector<1x256xi1> to vector<8x256xi1>
    %68 = vector.broadcast %cst_21 : f32 to vector<8x256xf32>
    %69 = arith.select %67, %65, %68 : vector<8x256xi1>, vector<8x256xf32>
    %70 = vector.extract_strided_slice %54 {offsets = [0, 16], sizes = [8, 256], strides = [1, 1]} : vector<8x290xf32> to vector<8x256xf32>
    %cst_22 = arith.constant 0.000000e+00 : f32
    %71 = vector.shape_cast %56 : vector<1x256xi1> to vector<1x256xi1>
    %72 = vector.broadcast %71 : vector<1x256xi1> to vector<8x256xi1>
    %73 = vector.broadcast %cst_22 : f32 to vector<8x256xf32>
    %74 = arith.select %72, %70, %73 : vector<8x256xi1>, vector<8x256xf32>
    %75 = vector.extract_strided_slice %54 {offsets = [0, 18], sizes = [8, 256], strides = [1, 1]} : vector<8x290xf32> to vector<8x256xf32>
    %cst_23 = arith.constant 0.000000e+00 : f32
    %76 = vector.shape_cast %58 : vector<1x256xi1> to vector<1x256xi1>
    %77 = vector.broadcast %76 : vector<1x256xi1> to vector<8x256xi1>
    %78 = vector.broadcast %cst_23 : f32 to vector<8x256xf32>
    %79 = arith.select %77, %75, %78 : vector<8x256xi1>, vector<8x256xf32>
    %80 = vector.extract_strided_slice %54 {offsets = [0, 32], sizes = [8, 256], strides = [1, 1]} : vector<8x290xf32> to vector<8x256xf32>
    %cst_24 = arith.constant 0.000000e+00 : f32
    %81 = vector.shape_cast %56 : vector<1x256xi1> to vector<1x256xi1>
    %82 = vector.broadcast %81 : vector<1x256xi1> to vector<8x256xi1>
    %83 = vector.broadcast %cst_24 : f32 to vector<8x256xf32>
    %84 = arith.select %82, %80, %83 : vector<8x256xi1>, vector<8x256xf32>
    %85 = vector.extract_strided_slice %54 {offsets = [0, 33], sizes = [8, 256], strides = [1, 1]} : vector<8x290xf32> to vector<8x256xf32>
    %86 = vector.extract_strided_slice %54 {offsets = [0, 34], sizes = [8, 256], strides = [1, 1]} : vector<8x290xf32> to vector<8x256xf32>
    %cst_25 = arith.constant 0.000000e+00 : f32
    %87 = vector.shape_cast %58 : vector<1x256xi1> to vector<1x256xi1>
    %88 = vector.broadcast %87 : vector<1x256xi1> to vector<8x256xi1>
    %89 = vector.broadcast %cst_25 : f32 to vector<8x256xf32>
    %90 = arith.select %88, %86, %89 : vector<8x256xi1>, vector<8x256xf32>
    %91 = tpu.concatenate %63, %64, %69, %74, %52, %79, %84, %85, %90 in 0 : vector<8x256xf32>, vector<8x256xf32>, vector<8x256xf32>, vector<8x256xf32>, vector<8x256xf32>, vector<8x256xf32>, vector<8x256xf32>, vector<8x256xf32>, vector<8x256xf32> -> vector<72x256xf32>
    %92 = arith.truncf %91 : vector<72x256xf32> to vector<72x256xbf16>
    %c0_26 = arith.constant 0 : index
    %c0_27 = arith.constant 0 : index
    %93 = vector.load %arg13[%c0_26, %c0_27] : memref<8x72xbf16, #tpu.memory_space<vmem>>, vector<8x72xbf16>
    %cst_28 = arith.constant dense<0.000000e+00> : vector<8x256xf32>
    %94 = tpu.matmul %93, %92, %cst_28 {dimension_numbers = #tpu.dot_dimension_numbers<[1], [0], [0], [1], [0, 0, 1, 1], [], []>} : vector<8x72xbf16>, vector<72x256xbf16>, vector<8x256xf32> -> vector<8x256xf32>
    %c0_29 = arith.constant 0 : index
    %c0_30 = arith.constant 0 : index
    %95 = vector.load %arg14[%c0_29, %c0_30] : memref<8x1xf32, #tpu.memory_space<vmem>>, vector<8x1xf32>
    %96 = vector.broadcast %95 : vector<8x1xf32> to vector<8x256xf32>
    %97 = arith.addf %94, %96 : vector<8x256xf32>
    %c0_31 = arith.constant 0 : index
    %c0_32 = arith.constant 0 : index
    %98 = vector.load %arg5[%c0_31, %c0_32] : memref<8x72xbf16, #tpu.memory_space<vmem>>, vector<8x72xbf16>
    %cst_33 = arith.constant dense<0.000000e+00> : vector<8x256xf32>
    %99 = tpu.matmul %98, %92, %cst_33 {dimension_numbers = #tpu.dot_dimension_numbers<[1], [0], [0], [1], [0, 0, 1, 1], [], []>} : vector<8x72xbf16>, vector<72x256xbf16>, vector<8x256xf32> -> vector<8x256xf32>
    %c0_34 = arith.constant 0 : index
    %c0_35 = arith.constant 0 : index
    %100 = vector.load %arg6[%c0_34, %c0_35] : memref<8x1xf32, #tpu.memory_space<vmem>>, vector<8x1xf32>
    %101 = vector.broadcast %100 : vector<8x1xf32> to vector<8x256xf32>
    %102 = arith.addf %99, %101 : vector<8x256xf32>
    %cst_36 = arith.constant 0.000000e+00 : f32
    %103 = vector.broadcast %cst_36 : f32 to vector<8x256xf32>
    %104 = arith.cmpf ogt, %102, %103 : vector<8x256xf32>
    %cst_37 = arith.constant 2.000000e-01 : f32
    %105 = vector.broadcast %cst_37 : f32 to vector<8x256xf32>
    %106 = arith.mulf %105, %102 : vector<8x256xf32>
    %107 = arith.select %104, %102, %106 : vector<8x256xi1>, vector<8x256xf32>
    %cst_38 = arith.constant 0.000000e+00 : f32
    %108 = vector.broadcast %cst_38 : f32 to vector<8x34xf32>
    %109 = tpu.concatenate %108, %107, %108 in 1 : vector<8x34xf32>, vector<8x256xf32>, vector<8x34xf32> -> vector<8x324xf32>
    %c2_i32 = arith.constant 2 : i32
    %110 = vector.broadcast %c2_i32 : i32 to vector<1x256xi32>
    %111 = arith.cmpi sge, %0, %110 : vector<1x256xi32>
    %c14_i32 = arith.constant 14 : i32
    %112 = vector.broadcast %c14_i32 : i32 to vector<1x256xi32>
    %113 = arith.cmpi slt, %0, %112 : vector<1x256xi32>
    %114 = vector.extract_strided_slice %109 {offsets = [0, 0], sizes = [8, 256], strides = [1, 1]} : vector<8x324xf32> to vector<8x256xf32>
    %cst_39 = arith.constant 0.000000e+00 : f32
    %115 = vector.shape_cast %111 : vector<1x256xi1> to vector<1x256xi1>
    %116 = vector.broadcast %115 : vector<1x256xi1> to vector<8x256xi1>
    %117 = vector.broadcast %cst_39 : f32 to vector<8x256xf32>
    %118 = arith.select %116, %114, %117 : vector<8x256xi1>, vector<8x256xf32>
    %119 = vector.extract_strided_slice %109 {offsets = [0, 2], sizes = [8, 256], strides = [1, 1]} : vector<8x324xf32> to vector<8x256xf32>
    %120 = vector.extract_strided_slice %109 {offsets = [0, 4], sizes = [8, 256], strides = [1, 1]} : vector<8x324xf32> to vector<8x256xf32>
    %cst_40 = arith.constant 0.000000e+00 : f32
    %121 = vector.shape_cast %113 : vector<1x256xi1> to vector<1x256xi1>
    %122 = vector.broadcast %121 : vector<1x256xi1> to vector<8x256xi1>
    %123 = vector.broadcast %cst_40 : f32 to vector<8x256xf32>
    %124 = arith.select %122, %120, %123 : vector<8x256xi1>, vector<8x256xf32>
    %125 = vector.extract_strided_slice %109 {offsets = [0, 32], sizes = [8, 256], strides = [1, 1]} : vector<8x324xf32> to vector<8x256xf32>
    %cst_41 = arith.constant 0.000000e+00 : f32
    %126 = vector.shape_cast %111 : vector<1x256xi1> to vector<1x256xi1>
    %127 = vector.broadcast %126 : vector<1x256xi1> to vector<8x256xi1>
    %128 = vector.broadcast %cst_41 : f32 to vector<8x256xf32>
    %129 = arith.select %127, %125, %128 : vector<8x256xi1>, vector<8x256xf32>
    %130 = vector.extract_strided_slice %109 {offsets = [0, 36], sizes = [8, 256], strides = [1, 1]} : vector<8x324xf32> to vector<8x256xf32>
    %cst_42 = arith.constant 0.000000e+00 : f32
    %131 = vector.shape_cast %113 : vector<1x256xi1> to vector<1x256xi1>
    %132 = vector.broadcast %131 : vector<1x256xi1> to vector<8x256xi1>
    %133 = vector.broadcast %cst_42 : f32 to vector<8x256xf32>
    %134 = arith.select %132, %130, %133 : vector<8x256xi1>, vector<8x256xf32>
    %135 = vector.extract_strided_slice %109 {offsets = [0, 64], sizes = [8, 256], strides = [1, 1]} : vector<8x324xf32> to vector<8x256xf32>
    %cst_43 = arith.constant 0.000000e+00 : f32
    %136 = vector.shape_cast %111 : vector<1x256xi1> to vector<1x256xi1>
    %137 = vector.broadcast %136 : vector<1x256xi1> to vector<8x256xi1>
    %138 = vector.broadcast %cst_43 : f32 to vector<8x256xf32>
    %139 = arith.select %137, %135, %138 : vector<8x256xi1>, vector<8x256xf32>
    %140 = vector.extract_strided_slice %109 {offsets = [0, 66], sizes = [8, 256], strides = [1, 1]} : vector<8x324xf32> to vector<8x256xf32>
    %141 = vector.extract_strided_slice %109 {offsets = [0, 68], sizes = [8, 256], strides = [1, 1]} : vector<8x324xf32> to vector<8x256xf32>
    %cst_44 = arith.constant 0.000000e+00 : f32
    %142 = vector.shape_cast %113 : vector<1x256xi1> to vector<1x256xi1>
    %143 = vector.broadcast %142 : vector<1x256xi1> to vector<8x256xi1>
    %144 = vector.broadcast %cst_44 : f32 to vector<8x256xf32>
    %145 = arith.select %143, %141, %144 : vector<8x256xi1>, vector<8x256xf32>
    %146 = tpu.concatenate %118, %119, %124, %129, %107, %134, %139, %140, %145 in 0 : vector<8x256xf32>, vector<8x256xf32>, vector<8x256xf32>, vector<8x256xf32>, vector<8x256xf32>, vector<8x256xf32>, vector<8x256xf32>, vector<8x256xf32>, vector<8x256xf32> -> vector<72x256xf32>
    %147 = arith.truncf %146 : vector<72x256xf32> to vector<72x256xbf16>
    %c0_45 = arith.constant 0 : index
    %c0_46 = arith.constant 0 : index
    %148 = vector.load %arg7[%c0_45, %c0_46] : memref<8x72xbf16, #tpu.memory_space<vmem>>, vector<8x72xbf16>
    %cst_47 = arith.constant dense<0.000000e+00> : vector<8x256xf32>
    %149 = tpu.matmul %148, %147, %cst_47 {dimension_numbers = #tpu.dot_dimension_numbers<[1], [0], [0], [1], [0, 0, 1, 1], [], []>} : vector<8x72xbf16>, vector<72x256xbf16>, vector<8x256xf32> -> vector<8x256xf32>
    %c0_48 = arith.constant 0 : index
    %c0_49 = arith.constant 0 : index
    %150 = vector.load %arg8[%c0_48, %c0_49] : memref<8x1xf32, #tpu.memory_space<vmem>>, vector<8x1xf32>
    %151 = vector.broadcast %150 : vector<8x1xf32> to vector<8x256xf32>
    %152 = arith.addf %149, %151 : vector<8x256xf32>
    %cst_50 = arith.constant 0.000000e+00 : f32
    %153 = vector.broadcast %cst_50 : f32 to vector<8x256xf32>
    %154 = arith.cmpf ogt, %152, %153 : vector<8x256xf32>
    %cst_51 = arith.constant 2.000000e-01 : f32
    %155 = vector.broadcast %cst_51 : f32 to vector<8x256xf32>
    %156 = arith.mulf %155, %152 : vector<8x256xf32>
    %157 = arith.select %154, %152, %156 : vector<8x256xi1>, vector<8x256xf32>
    %cst_52 = arith.constant 0.000000e+00 : f32
    %158 = vector.broadcast %cst_52 : f32 to vector<8x68xf32>
    %159 = tpu.concatenate %158, %157, %158 in 1 : vector<8x68xf32>, vector<8x256xf32>, vector<8x68xf32> -> vector<8x392xf32>
    %c4_i32 = arith.constant 4 : i32
    %160 = vector.broadcast %c4_i32 : i32 to vector<1x256xi32>
    %161 = arith.cmpi sge, %0, %160 : vector<1x256xi32>
    %c12_i32 = arith.constant 12 : i32
    %162 = vector.broadcast %c12_i32 : i32 to vector<1x256xi32>
    %163 = arith.cmpi slt, %0, %162 : vector<1x256xi32>
    %164 = vector.extract_strided_slice %159 {offsets = [0, 0], sizes = [8, 256], strides = [1, 1]} : vector<8x392xf32> to vector<8x256xf32>
    %cst_53 = arith.constant 0.000000e+00 : f32
    %165 = vector.shape_cast %161 : vector<1x256xi1> to vector<1x256xi1>
    %166 = vector.broadcast %165 : vector<1x256xi1> to vector<8x256xi1>
    %167 = vector.broadcast %cst_53 : f32 to vector<8x256xf32>
    %168 = arith.select %166, %164, %167 : vector<8x256xi1>, vector<8x256xf32>
    %169 = vector.extract_strided_slice %159 {offsets = [0, 4], sizes = [8, 256], strides = [1, 1]} : vector<8x392xf32> to vector<8x256xf32>
    %170 = vector.extract_strided_slice %159 {offsets = [0, 8], sizes = [8, 256], strides = [1, 1]} : vector<8x392xf32> to vector<8x256xf32>
    %cst_54 = arith.constant 0.000000e+00 : f32
    %171 = vector.shape_cast %163 : vector<1x256xi1> to vector<1x256xi1>
    %172 = vector.broadcast %171 : vector<1x256xi1> to vector<8x256xi1>
    %173 = vector.broadcast %cst_54 : f32 to vector<8x256xf32>
    %174 = arith.select %172, %170, %173 : vector<8x256xi1>, vector<8x256xf32>
    %175 = vector.extract_strided_slice %159 {offsets = [0, 64], sizes = [8, 256], strides = [1, 1]} : vector<8x392xf32> to vector<8x256xf32>
    %cst_55 = arith.constant 0.000000e+00 : f32
    %176 = vector.shape_cast %161 : vector<1x256xi1> to vector<1x256xi1>
    %177 = vector.broadcast %176 : vector<1x256xi1> to vector<8x256xi1>
    %178 = vector.broadcast %cst_55 : f32 to vector<8x256xf32>
    %179 = arith.select %177, %175, %178 : vector<8x256xi1>, vector<8x256xf32>
    %180 = vector.extract_strided_slice %159 {offsets = [0, 72], sizes = [8, 256], strides = [1, 1]} : vector<8x392xf32> to vector<8x256xf32>
    %cst_56 = arith.constant 0.000000e+00 : f32
    %181 = vector.shape_cast %163 : vector<1x256xi1> to vector<1x256xi1>
    %182 = vector.broadcast %181 : vector<1x256xi1> to vector<8x256xi1>
    %183 = vector.broadcast %cst_56 : f32 to vector<8x256xf32>
    %184 = arith.select %182, %180, %183 : vector<8x256xi1>, vector<8x256xf32>
    %185 = vector.extract_strided_slice %159 {offsets = [0, 128], sizes = [8, 256], strides = [1, 1]} : vector<8x392xf32> to vector<8x256xf32>
    %cst_57 = arith.constant 0.000000e+00 : f32
    %186 = vector.shape_cast %161 : vector<1x256xi1> to vector<1x256xi1>
    %187 = vector.broadcast %186 : vector<1x256xi1> to vector<8x256xi1>
    %188 = vector.broadcast %cst_57 : f32 to vector<8x256xf32>
    %189 = arith.select %187, %185, %188 : vector<8x256xi1>, vector<8x256xf32>
    %190 = vector.extract_strided_slice %159 {offsets = [0, 132], sizes = [8, 256], strides = [1, 1]} : vector<8x392xf32> to vector<8x256xf32>
    %191 = vector.extract_strided_slice %159 {offsets = [0, 136], sizes = [8, 256], strides = [1, 1]} : vector<8x392xf32> to vector<8x256xf32>
    %cst_58 = arith.constant 0.000000e+00 : f32
    %192 = vector.shape_cast %163 : vector<1x256xi1> to vector<1x256xi1>
    %193 = vector.broadcast %192 : vector<1x256xi1> to vector<8x256xi1>
    %194 = vector.broadcast %cst_58 : f32 to vector<8x256xf32>
    %195 = arith.select %193, %191, %194 : vector<8x256xi1>, vector<8x256xf32>
    %196 = tpu.concatenate %168, %169, %174, %179, %157, %184, %189, %190, %195 in 0 : vector<8x256xf32>, vector<8x256xf32>, vector<8x256xf32>, vector<8x256xf32>, vector<8x256xf32>, vector<8x256xf32>, vector<8x256xf32>, vector<8x256xf32>, vector<8x256xf32> -> vector<72x256xf32>
    %197 = arith.truncf %196 : vector<72x256xf32> to vector<72x256xbf16>
    %c0_59 = arith.constant 0 : index
    %c0_60 = arith.constant 0 : index
    %198 = vector.load %arg9[%c0_59, %c0_60] : memref<8x72xbf16, #tpu.memory_space<vmem>>, vector<8x72xbf16>
    %cst_61 = arith.constant dense<0.000000e+00> : vector<8x256xf32>
    %199 = tpu.matmul %198, %197, %cst_61 {dimension_numbers = #tpu.dot_dimension_numbers<[1], [0], [0], [1], [0, 0, 1, 1], [], []>} : vector<8x72xbf16>, vector<72x256xbf16>, vector<8x256xf32> -> vector<8x256xf32>
    %c0_62 = arith.constant 0 : index
    %c0_63 = arith.constant 0 : index
    %200 = vector.load %arg10[%c0_62, %c0_63] : memref<8x1xf32, #tpu.memory_space<vmem>>, vector<8x1xf32>
    %201 = vector.broadcast %200 : vector<8x1xf32> to vector<8x256xf32>
    %202 = arith.addf %199, %201 : vector<8x256xf32>
    %cst_64 = arith.constant 0.000000e+00 : f32
    %203 = vector.broadcast %cst_64 : f32 to vector<8x256xf32>
    %204 = arith.cmpf ogt, %202, %203 : vector<8x256xf32>
    %cst_65 = arith.constant 2.000000e-01 : f32
    %205 = vector.broadcast %cst_65 : f32 to vector<8x256xf32>
    %206 = arith.mulf %205, %202 : vector<8x256xf32>
    %207 = arith.select %204, %202, %206 : vector<8x256xi1>, vector<8x256xf32>
    %208 = arith.addf %207, %52 : vector<8x256xf32>
    %cst_66 = arith.constant 0.000000e+00 : f32
    %209 = vector.broadcast %cst_66 : f32 to vector<8x17xf32>
    %210 = tpu.concatenate %209, %208, %209 in 1 : vector<8x17xf32>, vector<8x256xf32>, vector<8x17xf32> -> vector<8x290xf32>
    %c1_i32_67 = arith.constant 1 : i32
    %211 = vector.broadcast %c1_i32_67 : i32 to vector<1x256xi32>
    %212 = arith.cmpi sge, %0, %211 : vector<1x256xi32>
    %c15_i32_68 = arith.constant 15 : i32
    %213 = vector.broadcast %c15_i32_68 : i32 to vector<1x256xi32>
    %214 = arith.cmpi slt, %0, %213 : vector<1x256xi32>
    %215 = vector.extract_strided_slice %210 {offsets = [0, 0], sizes = [8, 256], strides = [1, 1]} : vector<8x290xf32> to vector<8x256xf32>
    %cst_69 = arith.constant 0.000000e+00 : f32
    %216 = vector.shape_cast %212 : vector<1x256xi1> to vector<1x256xi1>
    %217 = vector.broadcast %216 : vector<1x256xi1> to vector<8x256xi1>
    %218 = vector.broadcast %cst_69 : f32 to vector<8x256xf32>
    %219 = arith.select %217, %215, %218 : vector<8x256xi1>, vector<8x256xf32>
    %220 = vector.extract_strided_slice %210 {offsets = [0, 1], sizes = [8, 256], strides = [1, 1]} : vector<8x290xf32> to vector<8x256xf32>
    %221 = vector.extract_strided_slice %210 {offsets = [0, 2], sizes = [8, 256], strides = [1, 1]} : vector<8x290xf32> to vector<8x256xf32>
    %cst_70 = arith.constant 0.000000e+00 : f32
    %222 = vector.shape_cast %214 : vector<1x256xi1> to vector<1x256xi1>
    %223 = vector.broadcast %222 : vector<1x256xi1> to vector<8x256xi1>
    %224 = vector.broadcast %cst_70 : f32 to vector<8x256xf32>
    %225 = arith.select %223, %221, %224 : vector<8x256xi1>, vector<8x256xf32>
    %226 = vector.extract_strided_slice %210 {offsets = [0, 16], sizes = [8, 256], strides = [1, 1]} : vector<8x290xf32> to vector<8x256xf32>
    %cst_71 = arith.constant 0.000000e+00 : f32
    %227 = vector.shape_cast %212 : vector<1x256xi1> to vector<1x256xi1>
    %228 = vector.broadcast %227 : vector<1x256xi1> to vector<8x256xi1>
    %229 = vector.broadcast %cst_71 : f32 to vector<8x256xf32>
    %230 = arith.select %228, %226, %229 : vector<8x256xi1>, vector<8x256xf32>
    %231 = vector.extract_strided_slice %210 {offsets = [0, 18], sizes = [8, 256], strides = [1, 1]} : vector<8x290xf32> to vector<8x256xf32>
    %cst_72 = arith.constant 0.000000e+00 : f32
    %232 = vector.shape_cast %214 : vector<1x256xi1> to vector<1x256xi1>
    %233 = vector.broadcast %232 : vector<1x256xi1> to vector<8x256xi1>
    %234 = vector.broadcast %cst_72 : f32 to vector<8x256xf32>
    %235 = arith.select %233, %231, %234 : vector<8x256xi1>, vector<8x256xf32>
    %236 = vector.extract_strided_slice %210 {offsets = [0, 32], sizes = [8, 256], strides = [1, 1]} : vector<8x290xf32> to vector<8x256xf32>
    %cst_73 = arith.constant 0.000000e+00 : f32
    %237 = vector.shape_cast %212 : vector<1x256xi1> to vector<1x256xi1>
    %238 = vector.broadcast %237 : vector<1x256xi1> to vector<8x256xi1>
    %239 = vector.broadcast %cst_73 : f32 to vector<8x256xf32>
    %240 = arith.select %238, %236, %239 : vector<8x256xi1>, vector<8x256xf32>
    %241 = vector.extract_strided_slice %210 {offsets = [0, 33], sizes = [8, 256], strides = [1, 1]} : vector<8x290xf32> to vector<8x256xf32>
    %242 = vector.extract_strided_slice %210 {offsets = [0, 34], sizes = [8, 256], strides = [1, 1]} : vector<8x290xf32> to vector<8x256xf32>
    %cst_74 = arith.constant 0.000000e+00 : f32
    %243 = vector.shape_cast %214 : vector<1x256xi1> to vector<1x256xi1>
    %244 = vector.broadcast %243 : vector<1x256xi1> to vector<8x256xi1>
    %245 = vector.broadcast %cst_74 : f32 to vector<8x256xf32>
    %246 = arith.select %244, %242, %245 : vector<8x256xi1>, vector<8x256xf32>
    %247 = arith.addf %219, %220 : vector<8x256xf32>
    %248 = arith.addf %247, %225 : vector<8x256xf32>
    %249 = arith.addf %248, %230 : vector<8x256xf32>
    %250 = arith.addf %249, %208 : vector<8x256xf32>
    %251 = arith.addf %250, %235 : vector<8x256xf32>
    %252 = arith.addf %251, %240 : vector<8x256xf32>
    %253 = arith.addf %252, %241 : vector<8x256xf32>
    %254 = arith.addf %253, %246 : vector<8x256xf32>
    %cst_75 = arith.constant 0.111111112 : f32
    %255 = vector.broadcast %cst_75 : f32 to vector<8x256xf32>
    %256 = arith.mulf %254, %255 : vector<8x256xf32>
    %257 = arith.subf %208, %256 : vector<8x256xf32>
    %cst_76 = arith.constant 0.000000e+00 : f32
    %258 = vector.broadcast %cst_76 : f32 to vector<8x17xf32>
    %259 = tpu.concatenate %258, %257, %258 in 1 : vector<8x17xf32>, vector<8x256xf32>, vector<8x17xf32> -> vector<8x290xf32>
    %c1_i32_77 = arith.constant 1 : i32
    %260 = vector.broadcast %c1_i32_77 : i32 to vector<1x256xi32>
    %261 = arith.cmpi sge, %0, %260 : vector<1x256xi32>
    %c15_i32_78 = arith.constant 15 : i32
    %262 = vector.broadcast %c15_i32_78 : i32 to vector<1x256xi32>
    %263 = arith.cmpi slt, %0, %262 : vector<1x256xi32>
    %264 = vector.extract_strided_slice %259 {offsets = [0, 0], sizes = [8, 256], strides = [1, 1]} : vector<8x290xf32> to vector<8x256xf32>
    %cst_79 = arith.constant 0.000000e+00 : f32
    %265 = vector.shape_cast %261 : vector<1x256xi1> to vector<1x256xi1>
    %266 = vector.broadcast %265 : vector<1x256xi1> to vector<8x256xi1>
    %267 = vector.broadcast %cst_79 : f32 to vector<8x256xf32>
    %268 = arith.select %266, %264, %267 : vector<8x256xi1>, vector<8x256xf32>
    %269 = vector.extract_strided_slice %259 {offsets = [0, 1], sizes = [8, 256], strides = [1, 1]} : vector<8x290xf32> to vector<8x256xf32>
    %270 = vector.extract_strided_slice %259 {offsets = [0, 2], sizes = [8, 256], strides = [1, 1]} : vector<8x290xf32> to vector<8x256xf32>
    %cst_80 = arith.constant 0.000000e+00 : f32
    %271 = vector.shape_cast %263 : vector<1x256xi1> to vector<1x256xi1>
    %272 = vector.broadcast %271 : vector<1x256xi1> to vector<8x256xi1>
    %273 = vector.broadcast %cst_80 : f32 to vector<8x256xf32>
    %274 = arith.select %272, %270, %273 : vector<8x256xi1>, vector<8x256xf32>
    %275 = vector.extract_strided_slice %259 {offsets = [0, 16], sizes = [8, 256], strides = [1, 1]} : vector<8x290xf32> to vector<8x256xf32>
    %cst_81 = arith.constant 0.000000e+00 : f32
    %276 = vector.shape_cast %261 : vector<1x256xi1> to vector<1x256xi1>
    %277 = vector.broadcast %276 : vector<1x256xi1> to vector<8x256xi1>
    %278 = vector.broadcast %cst_81 : f32 to vector<8x256xf32>
    %279 = arith.select %277, %275, %278 : vector<8x256xi1>, vector<8x256xf32>
    %280 = vector.extract_strided_slice %259 {offsets = [0, 18], sizes = [8, 256], strides = [1, 1]} : vector<8x290xf32> to vector<8x256xf32>
    %cst_82 = arith.constant 0.000000e+00 : f32
    %281 = vector.shape_cast %263 : vector<1x256xi1> to vector<1x256xi1>
    %282 = vector.broadcast %281 : vector<1x256xi1> to vector<8x256xi1>
    %283 = vector.broadcast %cst_82 : f32 to vector<8x256xf32>
    %284 = arith.select %282, %280, %283 : vector<8x256xi1>, vector<8x256xf32>
    %285 = vector.extract_strided_slice %259 {offsets = [0, 32], sizes = [8, 256], strides = [1, 1]} : vector<8x290xf32> to vector<8x256xf32>
    %cst_83 = arith.constant 0.000000e+00 : f32
    %286 = vector.shape_cast %261 : vector<1x256xi1> to vector<1x256xi1>
    %287 = vector.broadcast %286 : vector<1x256xi1> to vector<8x256xi1>
    %288 = vector.broadcast %cst_83 : f32 to vector<8x256xf32>
    %289 = arith.select %287, %285, %288 : vector<8x256xi1>, vector<8x256xf32>
    %290 = vector.extract_strided_slice %259 {offsets = [0, 33], sizes = [8, 256], strides = [1, 1]} : vector<8x290xf32> to vector<8x256xf32>
    %291 = vector.extract_strided_slice %259 {offsets = [0, 34], sizes = [8, 256], strides = [1, 1]} : vector<8x290xf32> to vector<8x256xf32>
    %cst_84 = arith.constant 0.000000e+00 : f32
    %292 = vector.shape_cast %263 : vector<1x256xi1> to vector<1x256xi1>
    %293 = vector.broadcast %292 : vector<1x256xi1> to vector<8x256xi1>
    %294 = vector.broadcast %cst_84 : f32 to vector<8x256xf32>
    %295 = arith.select %293, %291, %294 : vector<8x256xi1>, vector<8x256xf32>
    %296 = tpu.concatenate %268, %269, %274, %279, %257, %284, %289, %290, %295 in 0 : vector<8x256xf32>, vector<8x256xf32>, vector<8x256xf32>, vector<8x256xf32>, vector<8x256xf32>, vector<8x256xf32>, vector<8x256xf32>, vector<8x256xf32>, vector<8x256xf32> -> vector<72x256xf32>
    %297 = arith.truncf %296 : vector<72x256xf32> to vector<72x256xbf16>
    %c0_85 = arith.constant 0 : index
    %c0_86 = arith.constant 0 : index
    %298 = vector.load %arg11[%c0_85, %c0_86] : memref<8x72xbf16, #tpu.memory_space<vmem>>, vector<8x72xbf16>
    %cst_87 = arith.constant dense<0.000000e+00> : vector<8x256xf32>
    %299 = tpu.matmul %298, %297, %cst_87 {dimension_numbers = #tpu.dot_dimension_numbers<[1], [0], [0], [1], [0, 0, 1, 1], [], []>} : vector<8x72xbf16>, vector<72x256xbf16>, vector<8x256xf32> -> vector<8x256xf32>
    %c0_88 = arith.constant 0 : index
    %c0_89 = arith.constant 0 : index
    %300 = vector.load %arg12[%c0_88, %c0_89] : memref<8x1xf32, #tpu.memory_space<vmem>>, vector<8x1xf32>
    %301 = vector.broadcast %300 : vector<8x1xf32> to vector<8x256xf32>
    %302 = arith.addf %299, %301 : vector<8x256xf32>
    %303 = arith.negf %302 : vector<8x256xf32>
    %304 = math.exp %303 : vector<8x256xf32>
    %cst_90 = arith.constant 1.000000e+00 : f32
    %305 = vector.broadcast %cst_90 : f32 to vector<8x256xf32>
    %306 = arith.addf %305, %304 : vector<8x256xf32>
    %307 = arith.divf %305, %306 : vector<8x256xf32>
    %308 = arith.mulf %208, %307 : vector<8x256xf32>
    %cst_91 = arith.constant dense<0.000000e+00> : vector<8xf32>
    %309 = vector.multi_reduction <add>, %52, %cst_91 [1] : vector<8x256xf32> to vector<8xf32>
    %310 = vector.shape_cast %309 : vector<8xf32> to vector<8x1xf32>
    %cst_92 = arith.constant 2.560000e+02 : f32
    %311 = vector.broadcast %cst_92 : f32 to vector<8x1xf32>
    %312 = arith.divf %310, %311 : vector<8x1xf32>
    %c0_93 = arith.constant 0 : index
    %c0_94 = arith.constant 0 : index
    %313 = vector.load %arg15[%c0_93, %c0_94] : memref<4x8xf32, #tpu.memory_space<vmem>>, vector<4x8xf32>
    %cst_95 = arith.constant dense<0.000000e+00> : vector<4x1xf32>
    %314 = tpu.matmul %313, %312, %cst_95 {dimension_numbers = #tpu.dot_dimension_numbers<[1], [0], [0], [1], [0, 0, 1, 1], [], []>} : vector<4x8xf32>, vector<8x1xf32>, vector<4x1xf32> -> vector<4x1xf32>
    %c0_96 = arith.constant 0 : index
    %c0_97 = arith.constant 0 : index
    %315 = vector.load %arg16[%c0_96, %c0_97] : memref<4x1xf32, #tpu.memory_space<vmem>>, vector<4x1xf32>
    %316 = arith.addf %314, %315 : vector<4x1xf32>
    %cst_98 = arith.constant 0.000000e+00 : f32
    %317 = vector.broadcast %cst_98 : f32 to vector<4x1xf32>
    %318 = arith.maximumf %316, %317 : vector<4x1xf32>
    %c0_99 = arith.constant 0 : index
    %c0_100 = arith.constant 0 : index
    %319 = vector.load %arg17[%c0_99, %c0_100] : memref<8x4xf32, #tpu.memory_space<vmem>>, vector<8x4xf32>
    %cst_101 = arith.constant dense<0.000000e+00> : vector<8x1xf32>
    %320 = tpu.matmul %319, %318, %cst_101 {dimension_numbers = #tpu.dot_dimension_numbers<[1], [0], [0], [1], [0, 0, 1, 1], [], []>} : vector<8x4xf32>, vector<4x1xf32>, vector<8x1xf32> -> vector<8x1xf32>
    %c0_102 = arith.constant 0 : index
    %c0_103 = arith.constant 0 : index
    %321 = vector.load %arg18[%c0_102, %c0_103] : memref<8x1xf32, #tpu.memory_space<vmem>>, vector<8x1xf32>
    %322 = arith.addf %320, %321 : vector<8x1xf32>
    %323 = arith.negf %322 : vector<8x1xf32>
    %324 = math.exp %323 : vector<8x1xf32>
    %cst_104 = arith.constant 1.000000e+00 : f32
    %325 = vector.broadcast %cst_104 : f32 to vector<8x1xf32>
    %326 = arith.addf %325, %324 : vector<8x1xf32>
    %327 = arith.divf %325, %326 : vector<8x1xf32>
    %328 = vector.broadcast %327 : vector<8x1xf32> to vector<8x256xf32>
    %329 = arith.mulf %328, %97 : vector<8x256xf32>
    %330 = arith.addf %52, %329 : vector<8x256xf32>
    %331 = tpu.concatenate %308, %330, %52 in 0 : vector<8x256xf32>, vector<8x256xf32>, vector<8x256xf32> -> vector<24x256xf32>
    %332 = arith.truncf %331 : vector<24x256xf32> to vector<24x256xbf16>
    %c0_105 = arith.constant 0 : index
    %c0_106 = arith.constant 0 : index
    %333 = vector.load %arg19[%c0_105, %c0_106] : memref<3x24xbf16, #tpu.memory_space<vmem>>, vector<3x24xbf16>
    %cst_107 = arith.constant dense<0.000000e+00> : vector<3x256xf32>
    %334 = tpu.matmul %333, %332, %cst_107 {dimension_numbers = #tpu.dot_dimension_numbers<[1], [0], [0], [1], [0, 0, 1, 1], [], []>} : vector<3x24xbf16>, vector<24x256xbf16>, vector<3x256xf32> -> vector<3x256xf32>
    %c0_108 = arith.constant 0 : index
    %c0_109 = arith.constant 0 : index
    %335 = vector.load %arg20[%c0_108, %c0_109] : memref<3x1xf32, #tpu.memory_space<vmem>>, vector<3x1xf32>
    %336 = vector.broadcast %335 : vector<3x1xf32> to vector<3x256xf32>
    %337 = arith.addf %334, %336 : vector<3x256xf32>
    %338 = vector.extract_strided_slice %337 {offsets = [0, 0], sizes = [1, 256], strides = [1, 1]} : vector<3x256xf32> to vector<1x256xf32>
    %339 = vector.extract_strided_slice %337 {offsets = [1, 0], sizes = [1, 256], strides = [1, 1]} : vector<3x256xf32> to vector<1x256xf32>
    %340 = vector.extract_strided_slice %337 {offsets = [2, 0], sizes = [1, 256], strides = [1, 1]} : vector<3x256xf32> to vector<1x256xf32>
    %341 = arith.maximumf %338, %339 : vector<1x256xf32>
    %342 = arith.maximumf %341, %340 : vector<1x256xf32>
    %343 = arith.subf %338, %342 : vector<1x256xf32>
    %344 = math.exp %343 : vector<1x256xf32>
    %345 = arith.subf %339, %342 : vector<1x256xf32>
    %346 = math.exp %345 : vector<1x256xf32>
    %347 = arith.subf %340, %342 : vector<1x256xf32>
    %348 = math.exp %347 : vector<1x256xf32>
    %349 = arith.addf %344, %346 : vector<1x256xf32>
    %350 = arith.addf %349, %348 : vector<1x256xf32>
    %cst_110 = arith.constant 1.000000e+00 : f32
    %351 = vector.broadcast %cst_110 : f32 to vector<1x256xf32>
    %352 = arith.divf %351, %350 : vector<1x256xf32>
    %353 = vector.broadcast %344 : vector<1x256xf32> to vector<8x256xf32>
    %354 = arith.mulf %353, %308 : vector<8x256xf32>
    %355 = vector.broadcast %346 : vector<1x256xf32> to vector<8x256xf32>
    %356 = arith.mulf %355, %330 : vector<8x256xf32>
    %357 = arith.addf %354, %356 : vector<8x256xf32>
    %358 = vector.broadcast %348 : vector<1x256xf32> to vector<8x256xf32>
    %359 = arith.mulf %358, %52 : vector<8x256xf32>
    %360 = arith.addf %357, %359 : vector<8x256xf32>
    %361 = vector.broadcast %352 : vector<1x256xf32> to vector<8x256xf32>
    %362 = arith.mulf %360, %361 : vector<8x256xf32>
    %c0_111 = arith.constant 0 : index
    %c0_112 = arith.constant 0 : index
    %c0_113 = arith.constant 0 : index
    %363 = vector.load %arg21[%c0_111, %c0_112, %c0_113] : memref<1x8x256xf32, #tpu.memory_space<vmem>>, vector<1x8x256xf32>
    %364 = vector.shape_cast %363 : vector<1x8x256xf32> to vector<8x256xf32>
    %365 = vector.shape_cast %362 : vector<8x256xf32> to vector<1x8x256xf32>
    tpu.vector_store %arg21[%c0_111, %c0_112, %c0_113], %365 {strides = array<i32>} : memref<1x8x256xf32, #tpu.memory_space<vmem>>, vector<1x8x256xf32>,
    return
  }
  func.func @transform_0(%arg0: i32) -> (i32, i32, i32) {
    %c0_i32 = arith.constant 0 : i32
    %c0_i32_0 = arith.constant 0 : i32
    %c0_i32_1 = arith.constant 0 : i32
    return %arg0, %c0_i32, %c0_i32_0 : i32, i32, i32
  }
  func.func @transform_1(%arg0: i32) -> (i32, i32) {
    %c0_i32 = arith.constant 0 : i32
    %c0_i32_0 = arith.constant 0 : i32
    %c0_i32_1 = arith.constant 0 : i32
    return %c0_i32, %c0_i32_0 : i32, i32
  }
  func.func @transform_2(%arg0: i32) -> (i32, i32) {
    %c0_i32 = arith.constant 0 : i32
    %c0_i32_0 = arith.constant 0 : i32
    %c0_i32_1 = arith.constant 0 : i32
    return %c0_i32, %c0_i32_0 : i32, i32
  }
  func.func @transform_3(%arg0: i32) -> (i32, i32) {
    %c0_i32 = arith.constant 0 : i32
    %c0_i32_0 = arith.constant 0 : i32
    %c0_i32_1 = arith.constant 0 : i32
    return %c0_i32, %c0_i32_0 : i32, i32
  }
  func.func @transform_4(%arg0: i32) -> (i32, i32) {
    %c0_i32 = arith.constant 0 : i32
    %c0_i32_0 = arith.constant 0 : i32
    %c0_i32_1 = arith.constant 0 : i32
    return %c0_i32, %c0_i32_0 : i32, i32
  }
  func.func @transform_5(%arg0: i32) -> (i32, i32) {
    %c0_i32 = arith.constant 0 : i32
    %c0_i32_0 = arith.constant 0 : i32
    %c0_i32_1 = arith.constant 0 : i32
    return %c0_i32, %c0_i32_0 : i32, i32
  }
  func.func @transform_6(%arg0: i32) -> (i32, i32) {
    %c0_i32 = arith.constant 0 : i32
    %c0_i32_0 = arith.constant 0 : i32
    %c0_i32_1 = arith.constant 0 : i32
    return %c0_i32, %c0_i32_0 : i32, i32
  }
  func.func @transform_7(%arg0: i32) -> (i32, i32) {
    %c0_i32 = arith.constant 0 : i32
    %c0_i32_0 = arith.constant 0 : i32
    %c0_i32_1 = arith.constant 0 : i32
    return %c0_i32, %c0_i32_0 : i32, i32
  }
  func.func @transform_8(%arg0: i32) -> (i32, i32) {
    %c0_i32 = arith.constant 0 : i32
    %c0_i32_0 = arith.constant 0 : i32
    %c0_i32_1 = arith.constant 0 : i32
    return %c0_i32, %c0_i32_0 : i32, i32
  }
  func.func @transform_9(%arg0: i32) -> (i32, i32) {
    %c0_i32 = arith.constant 0 : i32
    %c0_i32_0 = arith.constant 0 : i32
    %c0_i32_1 = arith.constant 0 : i32
    return %c0_i32, %c0_i32_0 : i32, i32
  }
  func.func @transform_10(%arg0: i32) -> (i32, i32) {
    %c0_i32 = arith.constant 0 : i32
    %c0_i32_0 = arith.constant 0 : i32
    %c0_i32_1 = arith.constant 0 : i32
    return %c0_i32, %c0_i32_0 : i32, i32
  }
  func.func @transform_11(%arg0: i32) -> (i32, i32) {
    %c0_i32 = arith.constant 0 : i32
    %c0_i32_0 = arith.constant 0 : i32
    %c0_i32_1 = arith.constant 0 : i32
    return %c0_i32, %c0_i32_0 : i32, i32
  }
  func.func @transform_12(%arg0: i32) -> (i32, i32) {
    %c0_i32 = arith.constant 0 : i32
    %c0_i32_0 = arith.constant 0 : i32
    %c0_i32_1 = arith.constant 0 : i32
    return %c0_i32, %c0_i32_0 : i32, i32
  }
  func.func @transform_13(%arg0: i32) -> (i32, i32) {
    %c0_i32 = arith.constant 0 : i32
    %c0_i32_0 = arith.constant 0 : i32
    %c0_i32_1 = arith.constant 0 : i32
    return %c0_i32, %c0_i32_0 : i32, i32
  }
  func.func @transform_14(%arg0: i32) -> (i32, i32) {
    %c0_i32 = arith.constant 0 : i32
    %c0_i32_0 = arith.constant 0 : i32
    %c0_i32_1 = arith.constant 0 : i32
    return %c0_i32, %c0_i32_0 : i32, i32
  }
  func.func @transform_15(%arg0: i32) -> (i32, i32) {
    %c0_i32 = arith.constant 0 : i32
    %c0_i32_0 = arith.constant 0 : i32
    %c0_i32_1 = arith.constant 0 : i32
    return %c0_i32, %c0_i32_0 : i32, i32
  }
  func.func @transform_16(%arg0: i32) -> (i32, i32) {
    %c0_i32 = arith.constant 0 : i32
    %c0_i32_0 = arith.constant 0 : i32
    %c0_i32_1 = arith.constant 0 : i32
    return %c0_i32, %c0_i32_0 : i32, i32
  }
  func.func @transform_17(%arg0: i32) -> (i32, i32) {
    %c0_i32 = arith.constant 0 : i32
    %c0_i32_0 = arith.constant 0 : i32
    %c0_i32_1 = arith.constant 0 : i32
    return %c0_i32, %c0_i32_0 : i32, i32
  }
  func.func @transform_18(%arg0: i32) -> (i32, i32) {
    %c0_i32 = arith.constant 0 : i32
    %c0_i32_0 = arith.constant 0 : i32
    %c0_i32_1 = arith.constant 0 : i32
    return %c0_i32, %c0_i32_0 : i32, i32
  }
  func.func @transform_19(%arg0: i32) -> (i32, i32) {
    %c0_i32 = arith.constant 0 : i32
    %c0_i32_0 = arith.constant 0 : i32
    %c0_i32_1 = arith.constant 0 : i32
    return %c0_i32, %c0_i32_0 : i32, i32
  }
  func.func @transform_20(%arg0: i32) -> (i32, i32, i32) {
    %c0_i32 = arith.constant 0 : i32
    %c0_i32_0 = arith.constant 0 : i32
    %c0_i32_1 = arith.constant 0 : i32
    return %arg0, %c0_i32, %c0_i32_0 : i32, i32, i32
  }
}

</mosaic_0001>

<bundles_post_ra>
// kernel: tile.9
= control target key start
LH: loop header
LB: loop body
LE: loop exit
PB: predicated region body
PF: predicated region fallthrough
CT: control target
= control target key end

     0   :  { %s7_s6 = smov 3  ;;  %s21_s9 = smov 3  ;;  %vm4_vm0 = vcmask 130048   ;;  %vm11_vm1 = vcmask 1048448   ;;  %vm18_vm2 = vcmask 917248   ;;  %vm25_vm3 = vcmask 786048   ;;  %s129_s0 = inlined_call_operand.vmem [shape: s32[16,16], index: 0, kind: input, shape index: {}]   ;;  %s130_s1 = inlined_call_operand.vmem [shape: s32[1,256], index: 1, kind: output, shape index: {}]  }
   0x1   :  { %v67_v0 = vld [vmem:[%s129_s0 + $0x7] ss:$8 sm:%s7_s6]   ;;  %s82_s10 = smov 112   ;;  %v69_v1 = vld [vmem:[%s129_s0 + $0x5] ss:$8 sm:%s21_s9]   ;;  %s83_s13 = smov 80  }
   0x2   :  { %9 = vrot.lane.b32.xlu0 %v67_v0, %s82_s10  ;;  %23 = vrot.lane.b32.xlu1 %v69_v1, %s83_s13  ;;  %s14_s14 = smov 3  ;;  %s28_s15 = smov 3  ;;  %vm32_vm4 = vcmask 654848   ;;  %vm39_vm5 = vcmask 523648   ;;  %vm46_vm6 = vcmask 392448   ;;  %vm53_vm7 = vcmask 261248  }
   0x3   :  { %s35_s16 = smov 3  ;;  %v68_v3 = vld [vmem:[%s129_s0 + $0x6] ss:$8 sm:%s14_s14]   ;;  %s84_s21 = smov 48   ;;  %v70_v4 = vld [vmem:[%s129_s0 + $0x4] ss:$8 sm:%s28_s15]  }
   0x4   :  { %v71_v2 = vld [vmem:[%s129_s0 + $0x3] ss:$8 sm:%s35_s16]   ;;  %s42_s24 = smov 3  ;;  %s85_s25 = smov 96  }
   0x5   :  { %37 = vrot.lane.b32.xlu2 %v71_v2, %s84_s21  ;;  %s86_s26 = smov 64   ;;  %s49_s27 = smov 3  ;;  %v72_v5 = vld [vmem:[%s129_s0 + $0x2] ss:$8 sm:%s42_s24]  }
   0x6   :  { %v73_v6 = vld [vmem:[%s129_s0 + $0x1] ss:$8 sm:%s49_s27]   ;;  %s87_s3 = smov 32   ;;  %s88_s4 = smov 16  }
   0x7   :  { %s2_s5 = smov 3 }
   0x8   :  { %v3_v7 = vld [vmem:[%s129_s0] ss:$8 sm:%s2_s5]  }
   0x9   :  { %5 = vst.msk [vmem:[#allocation0] ss:$8 sm:$0x3] %vm4_vm0, %v3_v7  }
   0xa   :  { %16 = vrot.lane.b32.xlu0 %v68_v3, %s85_s25  ;;  %30 = vrot.lane.b32.xlu1 %v70_v4, %s86_s26 }
   0xd   :  { %44 = vrot.lane.b32.xlu2 %v72_v5, %s87_s3 }
  0x12   :  { %51 = vrot.lane.b32.xlu0 %v73_v6, %s88_s4 }
  0x5f   :  { %v38_v8 = vpop.permute.xlu2 %37  }
  0x67   :  { %v45_v9 = vpop.permute.xlu2 %44  }
  0x74   :  { %v10_v10 = vpop.permute.xlu0 %9   ;;  %v24_v11 = vpop.permute.xlu1 %23  }
  0x75   :  { %12 = vst.msk [vmem:[#allocation0] ss:$8 sm:$0x3] %vm11_vm1, %v10_v10  }
  0x7c   :  { %v17_v12 = vpop.permute.xlu0 %16   ;;  %v31_v13 = vpop.permute.xlu1 %30  }
  0x7d   :  { %19 = vst.msk [vmem:[#allocation0] ss:$8 sm:$0x3] %vm18_vm2, %v17_v12  }
  0x7e   :  { %26 = vst.msk [vmem:[#allocation0] ss:$8 sm:$0x3] %vm25_vm3, %v24_v11  }
  0x7f   :  { %33 = vst.msk [vmem:[#allocation0] ss:$8 sm:$0x3] %vm32_vm4, %v31_v13  }
  0x80   :  { %40 = vst.msk [vmem:[#allocation0] ss:$8 sm:$0x3] %vm39_vm5, %v38_v8  }
  0x81   :  { %47 = vst.msk [vmem:[#allocation0] ss:$8 sm:$0x3] %vm46_vm6, %v45_v9  }
  0x84   :  { %v52_v14 = vpop.permute.xlu0 %51  }
  0x85   :  { %54 = vst.msk [vmem:[#allocation0] ss:$8 sm:$0x3] %vm53_vm7, %v52_v14  }
  0x8c   :  { %v57_v15 = vld [vmem:[#allocation0] sm:$0x1]  ;;  %v62_v16 = vld [vmem:[#allocation0 + $0x8] sm:$0x1] }
  0x8d   :  { %60 = vst [vmem:[%s130_s1] sm:$0x1] %v57_v15 }
  0x8e   :  { %74 = vst [vmem:[%s130_s1 + $0x1] sm:$0x1] %v62_v16 }

// kernel: dual_path_block.1
= control target key start
LH: loop header
LB: loop body
LE: loop exit
PB: predicated region body
PF: predicated region fallthrough
CT: control target
= control target key end

     0   :  { %s3194_s0 = inlined_call_operand.vmem [shape: f32[2,8,256], index: 0, kind: input, shape index: {}]   ;;  %s3195_s1 = inlined_call_operand.vmem [shape: s32[1,256], index: 1, kind: input, shape index: {}]   ;;  %s3196_s2 = inlined_call_operand.vmem [shape: bf16[8,72], index: 2, kind: input, shape index: {}]   ;;  %s3197_s3 = inlined_call_operand.vmem [shape: f32[8,1], index: 3, kind: input, shape index: {}]   ;;  %s3198_s4 = inlined_call_operand.vmem [shape: bf16[8,72], index: 4, kind: input, shape index: {}]   ;;  %s3199_s5 = inlined_call_operand.vmem [shape: f32[8,1], index: 5, kind: input, shape index: {}]   ;;  %s3200_s6 = inlined_call_operand.vmem [shape: bf16[8,72], index: 6, kind: input, shape index: {}]   ;;  %s3201_s7 = inlined_call_operand.vmem [shape: f32[8,1], index: 7, kind: input, shape index: {}]   ;;  %s3202_s8 = inlined_call_operand.vmem [shape: bf16[8,72], index: 8, kind: input, shape index: {}]   ;;  %s3203_s9 = inlined_call_operand.vmem [shape: f32[8,1], index: 9, kind: input, shape index: {}]   ;;  %s3204_s10 = inlined_call_operand.vmem [shape: bf16[8,72], index: 10, kind: input, shape index: {}]   ;;  %s3205_s11 = inlined_call_operand.vmem [shape: f32[8,1], index: 11, kind: input, shape index: {}]   ;;  %s3206_s12 = inlined_call_operand.vmem [shape: bf16[8,72], index: 12, kind: input, shape index: {}]   ;;  %s3207_s13 = inlined_call_operand.vmem [shape: f32[8,1], index: 13, kind: input, shape index: {}]   ;;  %s3208_s14 = inlined_call_operand.vmem [shape: f32[4,8], index: 14, kind: input, shape index: {}]   ;;  %s3209_s15 = inlined_call_operand.vmem [shape: f32[4,1], index: 15, kind: input, shape index: {}]   ;;  %s3210_s16 = inlined_call_operand.vmem [shape: f32[8,4], index: 16, kind: input, shape index: {}]   ;;  %s3211_s17 = inlined_call_operand.vmem [shape: f32[8,1], index: 17, kind: input, shape index: {}]   ;;  %s3212_s18 = inlined_call_operand.vmem [shape: bf16[3,24], index: 18, kind: input, shape index: {}]   ;;  %s3213_s19 = inlined_call_operand.vmem [shape: f32[3,1], index: 19, kind: input, shape index: {}]   ;;  %s3214_s20 = inlined_call_operand.vmem [shape: f32[2,8,256], index: 20, kind: output, shape index: {}]  }
   0x1   :  { %3243 = sst [smem:[#allocation2_spill]] %s3194_s0 }
   0x2   :  { %3244 = sst [smem:[#allocation3_spill]] %s3195_s1  ;;  %s2491_s1 = smov 0  }
   0x3   :  { %3245 = sst [smem:[#allocation4_spill]] %s3196_s2 }
   0x4   :  { %3246 = sst [smem:[#allocation5_spill]] %s3197_s3 }
   0x5   :  { %3247 = sst [smem:[#allocation6_spill]] %s3198_s4 }
   0x6 LB: > { %s1933_s22 = sadd.s32 4294967295, %s2363_s1   ;;  %p1937_p0 = scmp.ge.s32.totalorder %s2363_s1, 1  ;;  %s2363_s1 = sphi %s2491_s1, %s30_s1  }
   0x7   : > { %p562_p1 = scmp.lt.s32.totalorder %s2363_s1, 3 }
   0x9   : > { %p563_p2 = pnand %p1937_p0, %p562_p1 }
   0xa   : > { %p620_p3 = scmp.lt.s32.totalorder (!%p563_p2), %s1933_s22, 1  ;;  %s3248_s25 = sld [smem:[#allocation2_spill]] (!%p563_p2) }
   0xb   : > { %566 = sbr.rel (%p563_p2) target bundleno = 2548 (0x9f4), region = 100  ;;  %s2365_s26 = smov (!%p563_p2), 17  }
   0xc   : > { %s2366_s27 = smov (!%p563_p2), 96   ;;  %s3229_s28 = smov (!%p563_p2), 94  }
   0xd   : > { %s2368_s4 = smov (!%p563_p2), 95   ;;  %s2369_s29 = smov (!%p563_p2), 110  }
   0xe   : > { %s2370_s30 = smov (!%p563_p2), 126   ;;  %s3227_s0 = smov (!%p563_p2), 112  }
   0xf   : > { %s2372_s21 = smov (!%p563_p2), 127   ;;  %s3258_s2 = sld [smem:[#allocation5_spill]] (!%p563_p2) }
  0x10   : > { %s3379_s22 = smov (!%p620_p3, %s1933_s22), 1  ;;  %vm3224_vm0 = vcmask 138240   ;;  %v2373_v10 = vmov 0   ;;  %vm3223_vm3 = vcmask 769024   ;;  %v3252_v24 = vmov 0  ;;  %s3271_s24 = sld [smem:[#allocation4_spill]] }
  0x11   : > { %s3226_s23 = sshll.u32 %s3379_s22, 4  ;;  %2179 = vset.pattern.permute.xlu0 %v2373_v10  ;;  %2220 = vset.pattern.permute.xlu2 %v2373_v10  ;;  %vm3225_vm6 = vcmask 1043456   ;;  %vm3219_vm8 = vcmask 785408   ;;  %vm3215_vm9 = vcmask 777216   ;;  %vm3216_vm11 = vmmov 1  }
  0x12   : > { %s624_s3 = scalar_lea.vmem %s3248_s25, %s3226_s23  ;;  %2326 = vset.pattern.permute.xlu1 %v2373_v10  ;;  %s3249_s25 = sld [smem:[#allocation3_spill]]  ;;  %v3259_v44 = vmov 0  ;;  %v3261_v49 = vmov 0  ;;  %vm3218_vm14 = vcmask 900096   ;;  %v3263_v59 = vmov 0 }
  0x13   : > { %v2507_v0 = vld [vmem:[%s624_s3] sm:$0xff]  ;;  %v2509_v1 = vld [vmem:[%s624_s3 + $0x8] sm:$0xff]  ;;  %s2376_s3 = smov 60   ;;  %s2380_s23 = smov 124  }
  0x14   : > { %v2139_v2 = vpack.i.bf16 %v2509_v1, %v2507_v0 }
  0x15   : > { %v761_v42 = vld [vmem:[%s3258_s2] sm:$0xff]  ;;  %s3284_s2 = sld [smem:[#allocation6_spill]] }
  0x16   : > { %2140 = vrot.lane.b32.xlu0 %v2139_v2, %s2365_s26  ;;  %v3265_v2 = vmov 0 }
  0x18   : > { %v2543_v12 = vld [vmem:[%s3249_s25] sm:$0x3]  ;;  %s2375_s25 = smov 34  }
  0x19   : > { %vm648_vm1 = vcmp.lt.s32.totalorder %v2543_v12, 15  ;;  %vm647_vm2 = vcmp.ge.s32.totalorder %v2543_v12, 1 }
  0x1a   : > { %v656_v14 = vsel %vm648_vm1, 1, %v2373_v10  ;;  %v649_v17 = vsel %vm647_vm2, 1, %v2373_v10  ;;  %vm3222_vm1 = vcmask 1031168  }
  0x1b   : > { %v657_v15 = vperm.slane %v656_v14, 0  ;;  %v658_v16 = vperm.slane %v656_v14, 1  ;;  %v650_v20 = vperm.slane %v649_v17, 0  ;;  %v651_v25 = vperm.slane %v649_v17, 1 }
  0x1d   : > { %vm2549_vm4 = vcmp.eq.s32.totalorder %v657_v15, 1  ;;  %vm2553_vm5 = vcmp.eq.s32.totalorder %v658_v16, 1  ;;  %vm2563_vm7 = vcmp.eq.s32.totalorder %v650_v20, 1  ;;  %vm2567_vm10 = vcmp.eq.s32.totalorder %v651_v25, 1 }
  0x1e   : > { %v3253_v24 = vsel %vm2553_vm5, 4294967295, %v3252_v24  ;;  %vm2579_vm12 = vmpackc.low %vm3216_vm11, %vm2563_vm7  ;;  %v3269_v15 = vmov 0 }
  0x1f   : > { %v3260_v44 = vsel %vm2579_vm12, 4294967295, %v3259_v44  ;;  %vm2590_vm13 = vmpackc.low %vm3216_vm11, %vm2567_vm10 }
  0x20   : > { %v3262_v49 = vsel %vm2590_vm13, 4294967295, %v3261_v49  ;;  %vm2601_vm15 = vmpackc.low %vm2549_vm4, %vm3216_vm11 }
  0x21   : > { %v3264_v59 = vsel %vm2601_vm15, 4294967295, %v3263_v59  ;;  %vm2610_vm2 = vmpackc.low %vm2553_vm5, %vm3216_vm11 }
  0x22   : > { %v3266_v2 = vsel %vm2610_vm2, 4294967295, %v3265_v2  ;;  %vm2626_vm11 = vmpackc.low %vm2563_vm7, %vm2549_vm4 }
  0x88   : > { %v2141_v3 = vpop.permute.xlu0 %2140 }
  0x89   : > { %v2143_v4 = vunpack.i.h.bf16 %v2141_v3  ;;  %v2142_v5 = vunpack.i.l.bf16 %v2141_v3 }
  0x8b   : > { %v646_v6 = vsel %vm3224_vm0, %v2143_v4, 0.0  ;;  %v2516_v7 = vsel %vm3224_vm0, %v2142_v5, %v2143_v4  ;;  %v2519_v8 = vsel %vm3224_vm0, 0.0, %v2142_v5 }
  0x8c   : > { %706 = vrot.lane.b32.xlu2 %v646_v6, %s2366_s27  ;;  %719 = vrot.lane.b32.xlu1 %v646_v6, %s3229_s28  ;;  %v2144_v9 = vpack.i.bf16 %v2516_v7, %v2519_v8 }
  0x8e   : > { %2145 = vrot.lane.b32.xlu0 %v2144_v9, %s3229_s28 }
  0x94   : > { %2155 = vrot.lane.b32.xlu2 %v2144_v9, %s2368_s4  ;;  %2150 = vrot.lane.b32.xlu1 %v2144_v9, %s2366_s27 }
  0x96   : > { %743 = vrot.lane.b32.xlu0 %v646_v6, %s2368_s4 }
  0x9c   : > { %693 = vrot.lane.b32.xlu2 %v646_v6, %s2369_s29  ;;  %2160 = vrot.lane.b32.xlu1 %v2144_v9, %s2369_s29 }
  0x9e   : > { %2165 = vrot.lane.b32.xlu0 %v2144_v9, %s2370_s30 }
  0xa4   : > { %2170 = vrot.lane.b32.xlu2 %v2144_v9, %s3227_s0  ;;  %667 = vrot.lane.b32.xlu1 %v646_v6, %s2370_s30 }
  0xa6   : > { %680 = vrot.lane.b32.xlu0 %v646_v6, %s3227_s0 }
  0xac   : > { %732 = vrot.lane.b32.xlu2 %v646_v6, %s2372_s21  ;;  %2175 = vrot.lane.b32.xlu1 %v2144_v9, %s2372_s21  ;;  %v3267_v9 = vmov 0 }
  0xad   : > { %v3268_v9 = vsel %vm2626_vm11, 4294967295, %v3267_v9 }
  0xae   : > { %764 = vperm.xlu0 %2179, %v761_v42  }
  0xe6   : > { %v707_v11 = vpop.permute.xlu2 %706 }
  0xee   : > { %v2156_v13 = vpop.permute.xlu2 %2155 }
  0xef   : > { %v2158_v32 = vunpack.i.h.bf16 %v2156_v13  ;;  %v2157_v33 = vunpack.i.l.bf16 %v2156_v13 }
  0xf1   : > { %v746_v48 = vsel %vm3215_vm9, %v2157_v33, %v2158_v32 }
  0xf6   : > { %v694_v26 = vpop.permute.xlu2 %693 }
  0xfe   : > { %v720_v18 = vpop.permute.xlu1 %719  ;;  %v2171_v52 = vpop.permute.xlu2 %2170 }
  0xff   : > { %v2173_v56 = vunpack.i.h.bf16 %v2171_v52  ;;  %v2172_v57 = vunpack.i.l.bf16 %v2171_v52 }
 0x100   : > { %v2146_v19 = vpop.permute.xlu0 %2145 }
 0x101   : > { %v2148_v21 = vunpack.i.h.bf16 %v2146_v19  ;;  %v2147_v22 = vunpack.i.l.bf16 %v2146_v19 }
 0x103   : > { %v722_v27 = vsel %vm3223_vm3, %v2147_v22, %v2148_v21  ;;  %v723_v28 = vsel %vm3223_vm3, %v2148_v21, %v720_v18 }
 0x104   : > { %v726_v29 = vsel %vm2549_vm4, %v722_v27, 0.0  ;;  %v727_v30 = vsel %vm2553_vm5, %v723_v28, 0.0  ;;  %v760_v27 = vld [vmem:[%s3271_s24] sm:$0xf]  ;;  %s2377_s24 = smov 64  }
 0x105   : > { %v758_v34 = vpack.c.bf16 %v726_v29, %v726_v29  ;;  %v759_v35 = vpack.c.bf16 %v727_v30, %v727_v30 }
 0x106   : > { %v2151_v36 = vpop.permute.xlu1 %2150  ;;  %v733_v20 = vpop.permute.xlu2 %732 }
 0x107   : > { %v2153_v38 = vunpack.i.h.bf16 %v2151_v36  ;;  %v2152_v39 = vunpack.i.l.bf16 %v2151_v36  ;;  %v773_v40 = vsel %vm3225_vm6, %v758_v34, 0  ;;  %v776_v41 = vsel %vm3225_vm6, %v759_v35, 0 }
 0x108   : > { %v744_v43 = vpop.permute.xlu0 %743  ;;  %781 = vmatpush.bf16.msra.mxu0 %v773_v40  ;;  %794 = vmatpush.bf16.msra.mxu1 %v776_v41 }
 0x109   : > { %v710_v45 = vsel %vm3219_vm8, %v2153_v38, %v707_v11  ;;  %v747_v46 = vsel %vm3215_vm9, %v2158_v32, %v744_v43  ;;  %v709_v47 = vsel %vm3219_vm8, %v2152_v39, %v2153_v38  ;;  %vm3220_vm9 = vcmask 916480  }
 0x10a   : > { %v1956_v50 = vpack.c.bf16 %v747_v46, %v710_v45  ;;  %v1943_v51 = vpack.c.bf16 %v746_v48, %v709_v47  ;;  %v683_v6 = vsel %vm3220_vm9, %v2172_v57, %v2173_v56  ;;  %vm3221_vm8 = vcmask 1039360  }
 0x10c   : > { %1944 = vmatpush.bf16.msk.msra.mxu0 %vm2579_vm12, %v1943_v51  ;;  %1957 = vmatpush.bf16.msk.msra.mxu1 %vm2590_vm13, %v1956_v50 }
 0x10e   : > { %v2161_v53 = vpop.permute.xlu1 %2160 }
 0x10f   : > { %v2163_v54 = vunpack.i.h.bf16 %v2161_v53  ;;  %v2162_v55 = vunpack.i.l.bf16 %v2161_v53 }
 0x110   : > { %v2166_v58 = vpop.permute.xlu0 %2165 }
 0x111   : > { %v2168_v60 = vunpack.i.h.bf16 %v2166_v58  ;;  %v2167_v61 = vunpack.i.l.bf16 %v2166_v58  ;;  %v696_v62 = vsel %vm3218_vm14, %v2162_v55, %v2163_v54  ;;  %v697_v63 = vsel %vm3218_vm14, %v2163_v54, %v694_v26  ;;  %vm2638_vm14 = vmpackc.low %vm2567_vm10, %vm2553_vm5 }
 0x112   : > { %v1946_v3 = vpack.c.bf16 %v696_v62, %v2507_v0  ;;  %v1959_v4 = vpack.c.bf16 %v697_v63, %v2509_v1  ;;  %v3270_v15 = vsel %vm2638_vm14, 4294967295, %v3269_v15 }
 0x113   : > { %v670_v5 = vsel %vm3222_vm1, %v2167_v61, %v2168_v60 }
 0x114   : > { %1947 = vmatpush.bf16.msk.msra.mxu0 %vm2601_vm15, %v1946_v3  ;;  %1960 = vmatpush.bf16.msk.msra.mxu1 %vm2610_vm2, %v1959_v4  ;;  %v1949_v1 = vpack.c.bf16 %v683_v6, %v670_v5  ;;  %v959_v6 = vld [vmem:[%s3199_s5] sm:$0xff] }
 0x116   : > { %v668_v0 = vpop.permute.xlu1 %667 }
 0x117   : > { %v671_v13 = vsel %vm3222_vm1, %v2168_v60, %v668_v0 }
 0x118   : > { %v681_v11 = vpop.permute.xlu0 %680  ;;  %1950 = vmatpush.bf16.msk.msra.mxu0 %vm2626_vm11, %v1949_v1 }
 0x119   : > { %v684_v14 = vsel %vm3220_vm9, %v2173_v56, %v681_v11  ;;  %vm3231_vm9 = vcmask 588800  }
 0x11a   : > { %v1962_v16 = vpack.c.bf16 %v684_v14, %v671_v13 }
 0x11c   : > { %1963 = vmatpush.bf16.msk.msra.mxu1 %vm2638_vm14, %v1962_v16 }
 0x11e   : > { %v2176_v17 = vpop.permute.xlu1 %2175 }
 0x11f   : > { %v2178_v18 = vunpack.i.h.bf16 %v2176_v17  ;;  %v2177_v19 = vunpack.i.l.bf16 %v2176_v17 }
 0x120   : > { %v765_v28 = vpop.permute.xlu0 %764 }
 0x121   : > { %v735_v21 = vsel %vm3221_vm8, %v2177_v19, %v2178_v18  ;;  %v736_v22 = vsel %vm3221_vm8, %v2178_v18, %v733_v20 }
 0x122   : > { %v1952_v25 = vpack.c.bf16 %v735_v21, %v2519_v8  ;;  %v1965_v26 = vpack.c.bf16 %v736_v22, %v2516_v7 }
 0x124   : > { %1953 = vmatpush.bf16.msk.msra.mxu0 %vm2579_vm12, %v1952_v25  ;;  %1966 = vmatpush.bf16.msk.msra.mxu1 %vm2590_vm13, %v1965_v26 }
 0x127   : > { %1954 = vmatmul.msk.bf16.vlgmr.msra.gmra.mxu0 %vm3231_vm9, %v760_v27  ;;  %1967 = vmatmul.msk.bf16.vlgmr.msra.gmra.mxu1 %vm3231_vm9, %v760_v27 }
 0x1a4   : > { %v787_v29 = vpop.f32.mrf.mxu0  ;;  %v800_v8 = vpop.f32.mrf.mxu1 }
 0x1a5   : > { %v788_v30 = vadd.f32 %v787_v29, %v765_v28  ;;  %v801_v7 = vadd.f32 %v800_v8, %v765_v28 }
 0x1a7   : > { %vm804_vm8 = vcmp.gt.f32.partialorder %v788_v30, 0.0  ;;  %v806_v32 = vmul.f32 0.2, %v788_v30  ;;  %vm805_vm1 = vcmp.gt.f32.partialorder %v801_v7, 0.0  ;;  %v807_v33 = vmul.f32 0.2, %v801_v7 }
 0x1a9   : > { %v2657_v34 = vsel %vm804_vm8, %v788_v30, %v806_v32  ;;  %v2659_v35 = vsel %vm805_vm1, %v801_v7, %v807_v33  ;;  %vm3272_vm8 = vcmask 785408  }
 0x1aa   : > { %v2180_v36 = vpack.i.bf16 %v2659_v35, %v2657_v34  ;;  %vm3273_vm1 = vmmov %vm3272_vm8 }
 0x1ac   : > { %v789_v38 = vpop.f32.mrf.mxu0  ;;  %v802_v39 = vpop.f32.mrf.mxu1  ;;  %2181 = vrot.lane.b32.xlu1 %v2180_v36, %s2365_s26 }
 0x21e   : > { %v2182_v40 = vpop.permute.xlu1 %2181 }
 0x21f   : > { %v2184_v41 = vunpack.i.h.bf16 %v2182_v40  ;;  %v2183_v42 = vunpack.i.l.bf16 %v2182_v40 }
 0x221   : > { %v821_v43 = vsel %vm3224_vm0, %v2184_v41, 0.0  ;;  %v2666_v45 = vsel %vm3224_vm0, %v2183_v42, %v2184_v41  ;;  %v2669_v46 = vsel %vm3224_vm0, 0.0, %v2183_v42 }
 0x222   : > { %866 = vrot.lane.b32.xlu0 %v821_v43, %s2366_s27  ;;  %878 = vrot.lane.b32.xlu1 %v821_v43, %s3229_s28  ;;  %v2185_v47 = vpack.i.bf16 %v2666_v45, %v2669_v46 }
 0x224   : > { %2186 = vrot.lane.b32.xlu2 %v2185_v47, %s3229_s28  ;;  %s3331_s28 = smov 112  }
 0x22a   : > { %2201 = vrot.lane.b32.xlu0 %v2185_v47, %s2369_s29  ;;  %2196 = vrot.lane.b32.xlu1 %v2185_v47, %s2368_s4 }
 0x22c   : > { %2191 = vrot.lane.b32.xlu2 %v2185_v47, %s2366_s27 }
 0x232   : > { %830 = vrot.lane.b32.xlu0 %v821_v43, %s2370_s30  ;;  %854 = vrot.lane.b32.xlu1 %v821_v43, %s2369_s29 }
 0x234   : > { %900 = vrot.lane.b32.xlu2 %v821_v43, %s2368_s4 }
 0x23a   : > { %2216 = vrot.lane.b32.xlu0 %v2185_v47, %s2372_s21  ;;  %2211 = vrot.lane.b32.xlu1 %v2185_v47, %s3227_s0 }
 0x23c   : > { %2206 = vrot.lane.b32.xlu2 %v2185_v47, %s2370_s30 }
 0x242   : > { %890 = vrot.lane.b32.xlu1 %v821_v43, %s2372_s21 }
 0x244   : > { %842 = vrot.lane.b32.xlu2 %v821_v43, %s3227_s0 }
 0x24c   : > { %962 = vperm.xlu2 %2220, %v959_v6  }
 0x27e   : > { %v2187_v48 = vpop.permute.xlu2 %2186 }
 0x27f   : > { %v2189_v50 = vunpack.i.h.bf16 %v2187_v48  ;;  %v2188_v51 = vunpack.i.l.bf16 %v2187_v48 }
 0x281   : > { %v880_v52 = vsel %vm3223_vm3, %v2188_v51, %v2189_v50 }
 0x282   : > { %v884_v53 = vsel %vm2549_vm4, %v880_v52, 0.0 }
 0x283   : > { %v914_v54 = vpack.c.bf16 %v884_v53, %v884_v53 }
 0x285   : > { %v927_v55 = vsel %vm3225_vm6, %v914_v54, 0 }
 0x286   : > { %935 = vmatpush.bf16.msra.mxu2 %v927_v55  ;;  %971 = vmatpush.bf16.msrb.mxu0 %v927_v55  ;;  %v2192_v56 = vpop.permute.xlu2 %2191 }
 0x287   : > { %v2194_v4 = vunpack.i.h.bf16 %v2192_v56  ;;  %v2193_v5 = vunpack.i.l.bf16 %v2192_v56 }
 0x289   : > { %v868_v18 = vsel %vm3273_vm1, %v2193_v5, %v2194_v4 }
 0x28e   : > { %v901_v63 = vpop.permute.xlu2 %900 }
 0x294   : > { %v867_v57 = vpop.permute.xlu0 %866  ;;  %v879_v58 = vpop.permute.xlu1 %878 }
 0x295   : > { %v881_v60 = vsel %vm3223_vm3, %v2189_v50, %v879_v58  ;;  %v869_v17 = vsel %vm3272_vm8, %v2194_v4, %v867_v57  ;;  %vm3274_vm3 = vcmask 777216   ;;  %vm3280_vm8 = vcmask 916480   ;;  %v958_v58 = vld [vmem:[%s3284_s2] sm:$0xf]  ;;  %s2378_s2 = smov 62  }
 0x296   : > { %v885_v61 = vsel %vm2553_vm5, %v881_v60, 0.0  ;;  %vm3275_vm0 = vmmov %vm3274_vm3  ;;  %v2207_v26 = vpop.permute.xlu2 %2206 }
 0x297   : > { %v915_v62 = vpack.c.bf16 %v885_v61, %v885_v61  ;;  %v2209_v7 = vunpack.i.h.bf16 %v2207_v26  ;;  %v2208_v32 = vunpack.i.l.bf16 %v2207_v26  ;;  %vm3281_vm1 = vmmov %vm3280_vm8 }
 0x299   : > { %v930_v3 = vsel %vm3225_vm6, %v915_v62, 0  ;;  %vm3276_vm6 = vcmask 900096  }
 0x29a   : > { %948 = vmatpush.bf16.msra.mxu3 %v930_v3  ;;  %984 = vmatpush.bf16.msrb.mxu1 %v930_v3 }
 0x29c   : > { %v2202_v0 = vpop.permute.xlu0 %2201  ;;  %v2197_v1 = vpop.permute.xlu1 %2196 }
 0x29d   : > { %v2204_v11 = vunpack.i.h.bf16 %v2202_v0  ;;  %v2203_v13 = vunpack.i.l.bf16 %v2202_v0  ;;  %v2199_v14 = vunpack.i.h.bf16 %v2197_v1  ;;  %v2198_v16 = vunpack.i.l.bf16 %v2197_v1 }
 0x29e   : > { %v843_v42 = vpop.permute.xlu2 %842 }
 0x29f   : > { %v902_v19 = vsel %vm3274_vm3, %v2198_v16, %v2199_v14  ;;  %v903_v20 = vsel %vm3275_vm0, %v2199_v14, %v901_v63  ;;  %v856_v25 = vsel %vm3276_vm6, %v2203_v13, %v2204_v11  ;;  %vm3277_vm0 = vmmov %vm3276_vm6  ;;  %vm3278_vm3 = vcmask 1031168  }
 0x2a0   : > { %v1969_v21 = vpack.c.bf16 %v902_v19, %v868_v18  ;;  %v1982_v22 = vpack.c.bf16 %v903_v20, %v869_v17  ;;  %v1972_v29 = vpack.c.bf16 %v856_v25, %v2657_v34  ;;  %vm3279_vm6 = vmmov %vm3278_vm3  ;;  %v1125_v20 = vld [vmem:[%s3201_s7] sm:$0xff] }
 0x2a1   : > { %v832_v47 = vsel %vm3279_vm6, %v2208_v32, %v2209_v7 }
 0x2a2   : > { %1970 = vmatpush.bf16.msk.msra.mxu2 %vm2579_vm12, %v1969_v21  ;;  %1983 = vmatpush.bf16.msk.msra.mxu3 %vm2590_vm13, %v1982_v22 }
 0x2a3   : > { %1996 = vmatpush.bf16.msk.msrb.mxu0 %vm2579_vm12, %v1969_v21  ;;  %2009 = vmatpush.bf16.msk.msrb.mxu1 %vm2590_vm13, %v1982_v22  ;;  %v916_v22 = vld [vmem:[%s3206_s12] sm:$0xf] }
 0x2a4   : > { %v831_v27 = vpop.permute.xlu0 %830  ;;  %v855_v28 = vpop.permute.xlu1 %854 }
 0x2a5   : > { %v857_v8 = vsel %vm3277_vm0, %v2204_v11, %v855_v28  ;;  %v833_v43 = vsel %vm3278_vm3, %v2209_v7, %v831_v27  ;;  %vm3282_vm0 = vcmask 1039360  }
 0x2a6   : > { %v1985_v30 = vpack.c.bf16 %v857_v8, %v2659_v35  ;;  %1973 = vmatpush.bf16.msk.msra.mxu2 %vm2601_vm15, %v1972_v29  ;;  %vm3283_vm3 = vmmov %vm3282_vm0 }
 0x2a7   : > { %1999 = vmatpush.bf16.msk.msrb.mxu0 %vm2601_vm15, %v1972_v29 }
 0x2a8   : > { %1986 = vmatpush.bf16.msk.msra.mxu3 %vm2610_vm2, %v1985_v30  ;;  %2012 = vmatpush.bf16.msk.msrb.mxu1 %vm2610_vm2, %v1985_v30  ;;  %vm3296_vm2 = vmmov 1  }
 0x2ac   : > { %v2217_v33 = vpop.permute.xlu0 %2216  ;;  %v2212_v36 = vpop.permute.xlu1 %2211 }
 0x2ad   : > { %v2219_v38 = vunpack.i.h.bf16 %v2217_v33  ;;  %v2218_v39 = vunpack.i.l.bf16 %v2217_v33  ;;  %v2214_v40 = vunpack.i.h.bf16 %v2212_v36  ;;  %v2213_v41 = vunpack.i.l.bf16 %v2212_v36 }
 0x2af   : > { %v844_v48 = vsel %vm3280_vm8, %v2213_v41, %v2214_v40  ;;  %v845_v50 = vsel %vm3281_vm1, %v2214_v40, %v843_v42  ;;  %v892_v53 = vsel %vm3282_vm0, %v2218_v39, %v2219_v38  ;;  %vm1006_vm1 = vcmask 277504  }
 0x2b0   : > { %v1975_v51 = vpack.c.bf16 %v844_v48, %v832_v47  ;;  %v1988_v52 = vpack.c.bf16 %v845_v50, %v833_v43  ;;  %v1978_v55 = vpack.c.bf16 %v892_v53, %v2669_v46  ;;  %vm1014_vm0 = vcmp.lt.s32.totalorder %v2543_v12, 14 }
 0x2b1   : > { %v1022_v25 = vsel %vm1014_vm0, 1, %v2373_v10 }
 0x2b2   : > { %1976 = vmatpush.bf16.msk.msra.mxu2 %vm2626_vm11, %v1975_v51  ;;  %1989 = vmatpush.bf16.msk.msra.mxu3 %vm2638_vm14, %v1988_v52  ;;  %v1023_v27 = vperm.slane %v1022_v25, 0  ;;  %v1024_v28 = vperm.slane %v1022_v25, 1 }
 0x2b3   : > { %2002 = vmatpush.bf16.msk.msrb.mxu0 %vm2626_vm11, %v1975_v51  ;;  %2015 = vmatpush.bf16.msk.msrb.mxu1 %vm2638_vm14, %v1988_v52  ;;  %vm3295_vm11 = vcmask 523264  }
 0x2b4   : > { %v891_v54 = vpop.permute.xlu1 %890 }
 0x2b5   : > { %v893_v56 = vsel %vm3283_vm3, %v2219_v38, %v891_v54  ;;  %vm1013_vm3 = vcmp.ge.s32.totalorder %v2543_v12, 2  ;;  %v1124_v38 = vld [vmem:[%s3200_s6] sm:$0xf] }
 0x2b6   : > { %v1991_v57 = vpack.c.bf16 %v893_v56, %v2666_v45  ;;  %1979 = vmatpush.bf16.msk.msra.mxu2 %vm2579_vm12, %v1978_v55  ;;  %v963_v45 = vpop.permute.xlu2 %962  ;;  %v1015_v29 = vsel %vm1013_vm3, 1, %v2373_v10 }
 0x2b7   : > { %2005 = vmatpush.bf16.msk.msrb.mxu0 %vm2579_vm12, %v1978_v55  ;;  %v1016_v7 = vperm.slane %v1015_v29, 0  ;;  %v1017_v39 = vperm.slane %v1015_v29, 1  ;;  %vm3302_vm12 = vcmask 785408  }
 0x2b8   : > { %1992 = vmatpush.bf16.msk.msra.mxu3 %vm2590_vm13, %v1991_v57  ;;  %2018 = vmatpush.bf16.msk.msrb.mxu1 %vm2590_vm13, %v1991_v57  ;;  %vm3299_vm13 = vmmov %vm3295_vm11 }
 0x2b9   : > { %1980 = vmatmul.msk.bf16.vlgmr.msra.gmra.mxu2 %vm3231_vm9, %v916_v22  ;;  %vm2795_vm3 = vcmp.eq.s32.totalorder %v1016_v7, 1  ;;  %vm2799_vm14 = vcmp.eq.s32.totalorder %v1017_v39, 1 }
 0x2ba   : > { %2006 = vmatmul.msk.bf16.vlgmr.msrb.gmra.mxu0 %vm3231_vm9, %v958_v58  ;;  %vm2809_vm15 = vmpackc.low %vm3296_vm2, %vm2795_vm3 }
 0x2bb   : > { %2019 = vmatmul.msk.bf16.vlgmr.msrb.gmra.mxu1 %vm3231_vm9, %v958_v58  ;;  %1993 = vmatmul.msk.bf16.vlgmr.msra.gmra.mxu3 %vm3231_vm9, %v916_v22  ;;  %vm1109_vm9 = vcmask 506880  }
 0x337   : > { %v977_v46 = vpop.f32.mrf.mxu0 }
 0x338   : > { %v978_v60 = vadd.f32 %v977_v46, %v963_v45  ;;  %v990_v61 = vpop.f32.mrf.mxu1 }
 0x339   : > { %v991_v62 = vadd.f32 %v990_v61, %v963_v45 }
 0x33a   : > { %vm994_vm6 = vcmp.gt.f32.partialorder %v978_v60, 0.0  ;;  %v996_v63 = vmul.f32 0.2, %v978_v60 }
 0x33b   : > { %vm995_vm8 = vcmp.gt.f32.partialorder %v991_v62, 0.0  ;;  %v997_v3 = vmul.f32 0.2, %v991_v62 }
 0x33c   : > { %v2751_v4 = vsel %vm994_vm6, %v978_v60, %v996_v63  ;;  %vm1086_vm6 = vcmask 490496  }
 0x33d   : > { %v2753_v5 = vsel %vm995_vm8, %v991_v62, %v997_v3  ;;  %vm2783_vm8 = vcmp.eq.s32.totalorder %v1023_v27, 1 }
 0x33e   : > { %v2221_v6 = vpack.i.bf16 %v2753_v5, %v2751_v4  ;;  %vm2026_vm5 = vmpackc.low %vm2795_vm3, %vm2783_vm8  ;;  %vm1178_vm3 = vcmask 556032  }
 0x33f   : > { %v979_v0 = vpop.f32.mrf.mxu0 }
 0x340   : > { %v992_v1 = vpop.f32.mrf.mxu1  ;;  %2222 = vrot.lane.b32.xlu0 %v2221_v6, %s2375_s25  ;;  %s2379_s25 = smov 92  }
 0x3b2   : > { %v2223_v11 = vpop.permute.xlu0 %2222 }
 0x3b3   : > { %v2225_v13 = vunpack.i.h.bf16 %v2223_v11  ;;  %v2224_v14 = vunpack.i.l.bf16 %v2223_v11 }
 0x3b5   : > { %v1012_v16 = vsel %vm1006_vm1, %v2225_v13, 0.0  ;;  %v2757_v17 = vsel %vm1006_vm1, %v2224_v14, %v2225_v13  ;;  %v2759_v18 = vsel %vm1006_vm1, 0.0, %v2224_v14  ;;  %vm2787_vm1 = vcmp.eq.s32.totalorder %v1024_v28, 1 }
 0x3b6   : > { %1084 = vrot.lane.b32.xlu2 %v1012_v16, %s2376_s3  ;;  %v2231_v19 = vpack.i.bf16 %v2757_v17, %v2759_v18 }
 0x3b8   : > { %2232 = vrot.lane.b32.xlu0 %v2231_v19, %s2377_s24  ;;  %2227 = vrot.lane.b32.xlu1 %v2231_v19, %s2376_s3  ;;  %s2383_s3 = smov 68  }
 0x3be   : > { %2237 = vrot.lane.b32.xlu2 %v2231_v19, %s2378_s2 }
 0x3c0   : > { %1107 = vrot.lane.b32.xlu0 %v1012_v16, %s2378_s2  ;;  %1071 = vrot.lane.b32.xlu1 %v1012_v16, %s2377_s24  ;;  %s2384_s2 = smov 56  }
 0x3c6   : > { %1058 = vrot.lane.b32.xlu2 %v1012_v16, %s2379_s25 }
 0x3c8   : > { %2247 = vrot.lane.b32.xlu0 %v2231_v19, %s2380_s23  ;;  %2242 = vrot.lane.b32.xlu1 %v2231_v19, %s2379_s25  ;;  %s2382_s25 = smov 120  }
 0x3ce   : > { %2252 = vrot.lane.b32.xlu2 %v2231_v19, %s2366_s27 }
 0x3d0   : > { %1046 = vrot.lane.b32.xlu0 %v1012_v16, %s2366_s27  ;;  %1033 = vrot.lane.b32.xlu1 %v1012_v16, %s2380_s23 }
 0x3d6   : > { %1097 = vrot.lane.b32.xlu2 %v1012_v16, %s2370_s30 }
 0x3d8   : > { %1128 = vperm.xlu0 %2179, %v1125_v20   ;;  %2257 = vrot.lane.b32.xlu1 %v2231_v19, %s2370_s30 }
 0x410   : > { %v1085_v21 = vpop.permute.xlu2 %1084 }
 0x418   : > { %v2238_v26 = vpop.permute.xlu2 %2237 }
 0x419   : > { %v2240_v51 = vunpack.i.h.bf16 %v2238_v26  ;;  %v2239_v52 = vunpack.i.l.bf16 %v2238_v26 }
 0x41b   : > { %v1110_v3 = vsel %vm1109_vm9, %v2239_v52, %v2240_v51  ;;  %v2860_v52 = vpop.f32.mrf.mxu3 }
 0x420   : > { %v1059_v53 = vpop.permute.xlu2 %1058 }
 0x428   : > { %v2253_v11 = vpop.permute.xlu2 %2252 }
 0x429   : > { %v2255_v22 = vunpack.i.h.bf16 %v2253_v11  ;;  %v2254_v25 = vunpack.i.l.bf16 %v2253_v11 }
 0x42a   : > { %v2233_v8 = vpop.permute.xlu0 %2232  ;;  %v2228_v30 = vpop.permute.xlu1 %2227 }
 0x42b   : > { %v2230_v32 = vunpack.i.h.bf16 %v2228_v30  ;;  %v2229_v33 = vunpack.i.l.bf16 %v2228_v30  ;;  %v2235_v40 = vunpack.i.h.bf16 %v2233_v8  ;;  %v2234_v41 = vunpack.i.l.bf16 %v2233_v8 }
 0x42c   : > { %v1048_v30 = vsel %vm3302_vm12, %v2254_v25, %v2255_v22 }
 0x42d   : > { %v1087_v42 = vsel %vm1086_vm6, %v2229_v33, %v2230_v32  ;;  %v1088_v43 = vsel %vm1086_vm6, %v2230_v32, %v1085_v21  ;;  %vm3293_vm6 = vcmask 1043456   ;;  %v1074_v45 = vsel %vm3295_vm11, %v2234_v41, %v2235_v40 }
 0x42e   : > { %v1091_v47 = vsel %vm2783_vm8, %v1087_v42, 0.0  ;;  %v1092_v48 = vsel %vm2787_vm1, %v1088_v43, 0.0  ;;  %vm3294_vm0 = vmmov %vm3293_vm6  ;;  %v2021_v1 = vpack.c.bf16 %v1110_v3, %v1074_v45  ;;  %vm1060_vm11 = vcmask 752640  }
 0x42f   : > { %v1122_v54 = vpack.c.bf16 %v1091_v47, %v1091_v47  ;;  %v1123_v55 = vpack.c.bf16 %v1092_v48, %v1092_v48 }
 0x430   : > { %v1098_v42 = vpop.permute.xlu2 %1097 }
 0x431   : > { %v1135_v57 = vsel %vm3293_vm6, %v1122_v54, 0  ;;  %v1138_v58 = vsel %vm3294_vm0, %v1123_v55, 0  ;;  %vm2817_vm0 = vmpackc.low %vm3296_vm2, %vm2799_vm14 }
 0x432   : > { %v1108_v46 = vpop.permute.xlu0 %1107  ;;  %v1072_v60 = vpop.permute.xlu1 %1071  ;;  %1143 = vmatpush.bf16.msrb.mxu2 %v1135_v57  ;;  %1156 = vmatpush.bf16.msrb.mxu3 %v1138_v58  ;;  %vm2036_vm6 = vmpackc.low %vm2787_vm1, %vm3296_vm2 }
 0x433   : > { %v1111_v62 = vsel %vm1109_vm9, %v2240_v51, %v1108_v46  ;;  %v1075_v63 = vsel %vm3299_vm13, %v2235_v40, %v1072_v60  ;;  %vm2023_vm9 = vmpackc.low %vm2783_vm8, %vm3296_vm2  ;;  %vm3242_vm13 = vcmask 1014784   ;;  %v2858_v51 = vpop.f32.mrf.mxu2 }
 0x434   : > { %v2034_v0 = vpack.c.bf16 %v1111_v62, %v1075_v63 }
 0x436   : > { %2022 = vmatpush.bf16.msk.msrb.mxu2 %vm2809_vm15, %v2021_v1  ;;  %2035 = vmatpush.bf16.msk.msrb.mxu3 %vm2817_vm0, %v2034_v0 }
 0x43a   : > { %v2248_v13 = vpop.permute.xlu0 %2247  ;;  %v2243_v14 = vpop.permute.xlu1 %2242 }
 0x43b   : > { %v2250_v16 = vunpack.i.h.bf16 %v2248_v13  ;;  %v2249_v19 = vunpack.i.l.bf16 %v2248_v13  ;;  %v2245_v20 = vunpack.i.h.bf16 %v2243_v14  ;;  %v2244_v21 = vunpack.i.l.bf16 %v2243_v14 }
 0x43d   : > { %v1061_v26 = vsel %vm1060_vm11, %v2244_v21, %v2245_v20  ;;  %v1062_v27 = vsel %vm1060_vm11, %v2245_v20, %v1059_v53  ;;  %v1036_v8 = vsel %vm3242_vm13, %v2249_v19, %v2250_v16  ;;  %vm3303_vm11 = vmmov %vm3302_vm12  ;;  %vm3304_vm12 = vcmask 1031168   ;;  %v1273_v20 = vld [vmem:[%s3203_s9] sm:$0xff] }
 0x43e   : > { %v2024_v28 = vpack.c.bf16 %v1061_v26, %v2751_v4  ;;  %v2037_v29 = vpack.c.bf16 %v1062_v27, %v2753_v5  ;;  %v2027_v33 = vpack.c.bf16 %v1048_v30, %v1036_v8  ;;  %vm3305_vm8 = vmmov %vm3304_vm12  ;;  %v2381_v53 = vmov 0.0  }
 0x43f   : > { %1242 = vrot.lane.b32.xlu0 %v2381_v53, %s2382_s25  ;;  %v1626_v21 = vadd.f32 %v2659_v35, %v2657_v34 }
 0x440   : > { %2025 = vmatpush.bf16.msk.msrb.mxu2 %vm2023_vm9, %v2024_v28  ;;  %2038 = vmatpush.bf16.msk.msrb.mxu3 %vm2036_vm6, %v2037_v29  ;;  %vm2039_vm9 = vmpackc.low %vm2799_vm14, %vm2787_vm1  ;;  %vm1207_vm6 = vcmask 982016  }
 0x442   : > { %v1047_v7 = vpop.permute.xlu0 %1046  ;;  %v1034_v32 = vpop.permute.xlu1 %1033 }
 0x443   : > { %v1049_v39 = vsel %vm3303_vm11, %v2255_v22, %v1047_v7  ;;  %v1037_v4 = vsel %vm3242_vm13, %v2250_v16, %v1034_v32 }
 0x444   : > { %v2040_v5 = vpack.c.bf16 %v1049_v39, %v1037_v4  ;;  %2028 = vmatpush.bf16.msk.msrb.mxu2 %vm2026_vm5, %v2027_v33  ;;  %vm3306_vm5 = vcmask 588800  }
 0x445   : > { %vm3307_vm14 = vmmov %vm3306_vm5 }
 0x446   : > { %2041 = vmatpush.bf16.msk.msrb.mxu3 %vm2039_vm9, %v2040_v5 }
 0x44a   : > { %v2258_v40 = vpop.permute.xlu1 %2257  ;;  %v1129_v54 = vpop.permute.xlu0 %1128 }
 0x44b   : > { %v2260_v36 = vunpack.i.h.bf16 %v2258_v40  ;;  %v2259_v41 = vunpack.i.l.bf16 %v2258_v40 }
 0x44d   : > { %v1099_v43 = vsel %vm3304_vm12, %v2259_v41, %v2260_v36  ;;  %v1100_v47 = vsel %vm3305_vm8, %v2260_v36, %v1098_v42  ;;  %vm3312_vm12 = vcmask 1043456  }
 0x44e   : > { %v2030_v48 = vpack.c.bf16 %v1099_v43, %v2759_v18  ;;  %v2043_v50 = vpack.c.bf16 %v1100_v47, %v2757_v17  ;;  %v943_v18 = vpop.f32.mrf.mxu2  ;;  %v956_v17 = vpop.f32.mrf.mxu3  ;;  %vm3313_vm8 = vmmov %vm3312_vm12 }
 0x450   : > { %2031 = vmatpush.bf16.msk.msrb.mxu2 %vm2809_vm15, %v2030_v48  ;;  %2044 = vmatpush.bf16.msk.msrb.mxu3 %vm2817_vm0, %v2043_v50  ;;  %vm1186_vm0 = vcmp.lt.s32.totalorder %v2543_v12, 12 }
 0x451   : > { %v1194_v22 = vsel %vm1186_vm0, 1, %v2373_v10 }
 0x452   : > { %v1195_v25 = vperm.slane %v1194_v22, 0  ;;  %v1196_v26 = vperm.slane %v1194_v22, 1 }
 0x453   : > { %2032 = vmatmul.msk.bf16.vlgmr.msrb.gmra.mxu2 %vm3306_vm5, %v1124_v38  ;;  %2045 = vmatmul.msk.bf16.vlgmr.msrb.gmra.mxu3 %vm3307_vm14, %v1124_v38  ;;  %vm1185_vm5 = vcmp.ge.s32.totalorder %v2543_v12, 4 }
 0x454   : > { %vm2893_vm11 = vcmp.eq.s32.totalorder %v1196_v26, 1  ;;  %vm2897_vm9 = vcmp.eq.s32.totalorder %v1195_v25, 1  ;;  %v1187_v43 = vsel %vm1185_vm5, 1, %v2373_v10  ;;  %vm3322_vm5 = vcmask 523264  }
 0x455   : > { %v1188_v47 = vperm.slane %v1187_v43, 0  ;;  %v1189_v48 = vperm.slane %v1187_v43, 1 }
 0x457   : > { %vm2911_vm14 = vcmp.eq.s32.totalorder %v1188_v47, 1 }
 0x4b1   : > { %v1243_v28 = vpop.permute.xlu0 %1242 }
 0x4d6   : > { %v1149_v55 = vpop.f32.mrf.mxu2  ;;  %v1162_v56 = vpop.f32.mrf.mxu3 }
 0x4d7   : > { %v1150_v57 = vadd.f32 %v1149_v55, %v1129_v54  ;;  %v1163_v58 = vadd.f32 %v1162_v56, %v1129_v54 }
 0x4d9   : > { %vm1166_vm15 = vcmp.gt.f32.partialorder %v1150_v57, 0.0  ;;  %v1168_v45 = vmul.f32 0.2, %v1150_v57  ;;  %vm1167_vm1 = vcmp.gt.f32.partialorder %v1163_v58, 0.0  ;;  %v1169_v46 = vmul.f32 0.2, %v1163_v58 }
 0x4db   : > { %v2863_v60 = vsel %vm1166_vm15, %v1150_v57, %v1168_v45  ;;  %v2865_v61 = vsel %vm1167_vm1, %v1163_v58, %v1169_v46  ;;  %vm2915_vm15 = vcmp.eq.s32.totalorder %v1189_v48, 1  ;;  %vm2922_vm1 = vmpackc.low %vm3296_vm2, %vm2911_vm14 }
 0x4dc   : > { %v2261_v62 = vpack.i.bf16 %v2865_v61, %v2863_v60  ;;  %vm2931_vm0 = vmpackc.low %vm3296_vm2, %vm2915_vm15 }
 0x4de   : > { %v1151_v63 = vpop.f32.mrf.mxu2  ;;  %v1164_v3 = vpop.f32.mrf.mxu3  ;;  %2262 = vrot.lane.b32.xlu1 %v2261_v62, %s2383_s3 }
 0x550   : > { %v2263_v6 = vpop.permute.xlu1 %2262 }
 0x551   : > { %v2265_v0 = vunpack.i.h.bf16 %v2263_v6  ;;  %v2264_v1 = vunpack.i.l.bf16 %v2263_v6 }
 0x553   : > { %v2869_v11 = vsel %vm1178_vm3, %v2265_v0, 0.0  ;;  %v1179_v13 = vsel %vm1178_vm3, %v2264_v1, %v2265_v0  ;;  %v2871_v14 = vsel %vm1178_vm3, 0.0, %v2264_v1  ;;  %vm1232_vm3 = vcmask 457728  }
 0x554   : > { %v2276_v16 = vpack.i.bf16 %v1179_v13, %v2871_v14  ;;  %v2271_v19 = vpack.i.bf16 %v2869_v11, %v1179_v13 }
 0x556   : > { %2277 = vrot.lane.b32.xlu0 %v2276_v16, %s2384_s2  ;;  %2272 = vrot.lane.b32.xlu1 %v2271_v19, %s2380_s23 }
 0x557   : > { %2267 = vrot.lane.b32.xlu2 %v2271_v19, %s2382_s25 }
 0x55e   : > { %2282 = vrot.lane.b32.xlu0 %v2276_v16, %s2377_s24  ;;  %1230 = vrot.lane.b32.xlu1 %v2869_v11, %s2384_s2  ;;  %s3330_s2 = smov 94  }
 0x55f   : > { %1258 = vrot.lane.b32.xlu2 %v2381_v53, %s2380_s23 }
 0x566   : > { %1276 = vperm.xlu0 %2179, %v1273_v20   ;;  %1218 = vrot.lane.b32.xlu1 %v2869_v11, %s2377_s24 }
 0x567   : > { %1201 = vrot.lane.b32.xlu2 %v2871_v14, %s2382_s25  ;;  %s3377_s25 = sshll.u32 %s3379_s22, 4 }
 0x56f   : > { %1248 = vrot.lane.b32.xlu2 %v2871_v14, %s2380_s23 }
 0x590   : > { %1627 = vadd.xlane.f32.xlu1 %v1626_v21 }
 0x5b1   : > { %v2268_v27 = vpop.permute.xlu2 %2267 }
 0x5b2   : > { %v2270_v29 = vunpack.i.h.bf16 %v2268_v27  ;;  %v2269_v8 = vunpack.i.l.bf16 %v2268_v27 }
 0x5b4   : > { %v1209_v32 = vsel %vm1207_vm6, %v2269_v8, %v2270_v29  ;;  %v1244_v33 = vsel %vm1207_vm6, %v2270_v29, %v1243_v28  ;;  %v1272_v28 = vld [vmem:[%s3202_s8] sm:$0xf] }
 0x5b5   : > { %v1247_v39 = vsel %vm2893_vm11, %v1244_v33, 0.0  ;;  %v1246_v4 = vsel %vm2897_vm9, %v1209_v32, 0.0 }
 0x5b6   : > { %v1271_v5 = vpack.c.bf16 %v1247_v39, %v1247_v39  ;;  %v1270_v40 = vpack.c.bf16 %v1246_v4, %v1246_v4 }
 0x5b8   : > { %v1283_v36 = vsel %vm3312_vm12, %v1270_v40, 0  ;;  %v1286_v41 = vsel %vm3313_vm8, %v1271_v5, 0  ;;  %vm2049_vm12 = vmpackc.low %vm2897_vm9, %vm3296_vm2 }
 0x5b9   : > { %1291 = vmatpush.bf16.msra.mxu0 %v1283_v36  ;;  %1304 = vmatpush.bf16.msra.mxu1 %v1286_v41  ;;  %v1259_v42 = vpop.permute.xlu2 %1258  ;;  %vm2062_vm8 = vmpackc.low %vm2893_vm11, %vm3296_vm2 }
 0x5ba   : > { %vm3324_vm2 = vmmov %vm3322_vm5 }
 0x5c1   : > { %v1202_v12 = vpop.permute.xlu2 %1201 }
 0x5c2   : > { %v1208_v19 = vsel %vm1207_vm6, %v1202_v12, %v2269_v8  ;;  %vm2065_vm6 = vmpackc.low %vm2915_vm15, %vm2893_vm11 }
 0x5c8   : > { %v2278_v38 = vpop.permute.xlu0 %2277  ;;  %v2273_v18 = vpop.permute.xlu1 %2272 }
 0x5c9   : > { %v2280_v53 = vunpack.i.h.bf16 %v2278_v38  ;;  %v2279_v54 = vunpack.i.l.bf16 %v2278_v38  ;;  %v2275_v55 = vunpack.i.h.bf16 %v2273_v18  ;;  %v2274_v56 = vunpack.i.l.bf16 %v2273_v18 }
 0x5cb   : > { %v1255_v57 = vsel %vm3242_vm13, %v2274_v56, %v2275_v55  ;;  %v1260_v58 = vsel %vm3242_vm13, %v2275_v55, %v1259_v42  ;;  %v1233_v63 = vsel %vm1232_vm3, %v2279_v54, %v2280_v53  ;;  %vm2052_vm13 = vmpackc.low %vm2911_vm14, %vm2897_vm9 }
 0x5cc   : > { %v2047_v46 = vpack.c.bf16 %v1255_v57, %v1179_v13  ;;  %v2060_v62 = vpack.c.bf16 %v1260_v58, %v2869_v11  ;;  %v2050_v6 = vpack.c.bf16 %v1233_v63, %v2863_v60  ;;  %v1249_v60 = vpop.permute.xlu2 %1248  ;;  %v1637_v57 = vld [vmem:[%s3208_s14] sm:$0xf] }
 0x5ce   : > { %2048 = vmatpush.bf16.msk.msra.mxu0 %vm2922_vm1, %v2047_v46  ;;  %2061 = vmatpush.bf16.msk.msra.mxu1 %vm2931_vm0, %v2060_v62 }
 0x5d0   : > { %v2283_v3 = vpop.permute.xlu0 %2282  ;;  %v1231_v0 = vpop.permute.xlu1 %1230 }
 0x5d1   : > { %v2285_v1 = vunpack.i.h.bf16 %v2283_v3  ;;  %v2284_v16 = vunpack.i.l.bf16 %v2283_v3  ;;  %v1234_v13 = vsel %vm1232_vm3, %v2280_v53, %v1231_v0  ;;  %vm3323_vm3 = vcmask 1014784  }
 0x5d2   : > { %v2063_v11 = vpack.c.bf16 %v1234_v13, %v2865_v61  ;;  %2051 = vmatpush.bf16.msk.msra.mxu0 %vm2049_vm12, %v2050_v6  ;;  %v1254_v22 = vsel %vm3323_vm3, %v1249_v60, %v2274_v56  ;;  %v1638_v6 = vld [vmem:[%s3209_s15] sm:$0xf]  ;;  %vm3332_vm3 = vcmask 1043456  }
 0x5d3   : > { %v1220_v20 = vsel %vm3322_vm5, %v2284_v16, %v2285_v1  ;;  %v2056_v25 = vpack.c.bf16 %v1254_v22, %v2871_v14  ;;  %v2385_v14 = vmov 256.0   ;;  %vm1666_vm5 = vcmask 31744  }
 0x5d4   : > { %v2053_v21 = vpack.c.bf16 %v1220_v20, %v1208_v19  ;;  %2064 = vmatpush.bf16.msk.msra.mxu1 %vm2062_vm8, %v2063_v11  ;;  %2327 = vrcp.f32 %v2385_v14  ;;  %vm1639_vm8 = vcmask 64512   ;;  %v1664_v19 = vld [vmem:[%s3210_s16] sm:$0xff] }
 0x5d6   : > { %2054 = vmatpush.bf16.msk.msra.mxu0 %vm2052_vm13, %v2053_v21  ;;  %vm3325_vm13 = vcmask 588800  }
 0x5d7   : > { %vm3326_vm9 = vmmov %vm3325_vm13 }
 0x5d8   : > { %v1219_v26 = vpop.permute.xlu1 %1218  ;;  %v1277_v5 = vpop.permute.xlu0 %1276 }
 0x5d9   : > { %v1221_v61 = vsel %vm3324_vm2, %v2285_v1, %v1219_v26  ;;  %vm3333_vm2 = vcmask 1031168  }
 0x5da   : > { %v2066_v27 = vpack.c.bf16 %v1221_v61, %v1209_v32  ;;  %2057 = vmatpush.bf16.msk.msra.mxu0 %vm2922_vm1, %v2056_v25  ;;  %v2328_v29 = vpop.eup %2327  ;;  %vm3327_vm1 = vcmask 138240  }
 0x5db   : > { %v1630_v8 = vmul.f32 256.0, %v2328_v29  ;;  %vm1634_vm11 = vweird.f32 %v2328_v29 }
 0x5dc   : > { %2067 = vmatpush.bf16.msk.msra.mxu1 %vm2065_vm6, %v2066_v27  ;;  %vm3334_vm6 = vcmask 1039360  }
 0x5dd   : > { %2058 = vmatmul.msk.bf16.vlgmr.msra.gmra.mxu0 %vm3325_vm13, %v1272_v28  ;;  %v1631_v30 = vsub.f32 1.0, %v1630_v8  ;;  %vm3335_vm13 = vcmask 916480  }
 0x5df   : > { %v1632_v7 = vmul.f32 %v2328_v29, %v1631_v30 }
 0x5e0   : > { %2070 = vmatpush.bf16.msk.msra.mxu1 %vm2931_vm0, %v2047_v46  ;;  %vm3328_vm0 = vmmov %vm3327_vm1 }
 0x5e1   : > { %v1633_v32 = vadd.f32 %v2328_v29, %v1632_v7  ;;  %vm3329_vm12 = vmmov %vm3328_vm0 }
 0x5e3   : > { %2071 = vmatmul.msk.bf16.vlgmr.msra.gmra.mxu1 %vm3326_vm9, %v1272_v28  ;;  %v1635_v33 = vsel %vm1634_vm11, %v2328_v29, %v1633_v32  ;;  %vm3336_vm9 = vmmov %vm3333_vm2  ;;  %vm3337_vm11 = vcmask 900096  }
 0x603   : > { %v1628_v39 = vpop.xlane.xlu1 %1627 }
 0x604   : > { %v1636_v4 = vmul.f32 %v1635_v33, %v1628_v39 }
 0x606   : > { %1658 = vmatpush.msrb.mxu0 %v1636_v4 }
 0x607   : > { %2100 = vmatmul.msk.f32.vlgmr.msrb.gmra.mxu0 %vm1639_vm8, %v1637_v57 }
 0x65a   : > { %v1297_v40 = vpop.f32.mrf.mxu0 }
 0x65b   : > { %v1298_v36 = vadd.f32 %v1297_v40, %v1277_v5 }
 0x65d   : > { %vm1314_vm14 = vcmp.gt.f32.partialorder %v1298_v36, 0.0  ;;  %v1316_v41 = vmul.f32 0.2, %v1298_v36 }
 0x65f   : > { %v1318_v42 = vsel %vm1314_vm14, %v1298_v36, %v1316_v41  ;;  %vm3338_vm14 = vmmov %vm3334_vm6 }
 0x660   : > { %v2971_v43 = vadd.f32 %v1318_v42, %v2657_v34  ;;  %v1310_v47 = vpop.f32.mrf.mxu1 }
 0x661   : > { %v1311_v48 = vadd.f32 %v1310_v47, %v1277_v5 }
 0x662   : > { %1324 = vrot.lane.b32.xlu2 %v2971_v43, %s2365_s26  ;;  %v1299_v50 = vpop.f32.mrf.mxu0 }
 0x663   : > { %vm1315_vm15 = vcmp.gt.f32.partialorder %v1311_v48, 0.0  ;;  %v1317_v38 = vmul.f32 0.2, %v1311_v48 }
 0x665   : > { %v1319_v18 = vsel %vm1315_vm15, %v1311_v48, %v1317_v38  ;;  %vm3339_vm15 = vmmov %vm3335_vm13 }
 0x666   : > { %v2976_v17 = vadd.f32 %v1319_v18, %v2659_v35 }
 0x668   : > { %v1312_v53 = vpop.f32.mrf.mxu1  ;;  %1326 = vrot.lane.b32.xlu0 %v2976_v17, %s2365_s26 }
 0x684   : > { %v1660_v0 = vpop.f32.mrf.mxu0 }
 0x685   : > { %v1661_v13 = vadd.f32 %v1660_v0, %v1638_v6 }
 0x687   : > { %v1663_v11 = vmax.f32 %v1661_v13, 0.0 }
 0x689   : > { %2101 = vmatpush.msk.msrb.mxu1 %vm3332_vm3, %v1663_v11  ;;  %vm3345_vm3 = vcmask 769024  }
 0x68a   : > { %2102 = vmatmul.msk.f32.vlgmr.msrb.gmra.mxu1 %vm1666_vm5, %v1664_v19  ;;  %vm3344_vm5 = vcmask 777216  }
 0x6bc   : > { %v1325_v54 = vpop.permute.xlu2 %1324 }
 0x6bd   : > { %v1332_v55 = vsel %vm3327_vm1, 0.0, %v1325_v54  ;;  %vm3340_vm1 = vcmask 785408  }
 0x6be   : > { %1398 = vrot.lane.b32.xlu2 %v1332_v55, %s2372_s21  ;;  %1362 = vrot.lane.b32.xlu1 %v1332_v55, %s2369_s29  ;;  %v1334_v14 = vsel %vm2563_vm7, %v1332_v55, 0.0  ;;  %vm3343_vm8 = vmmov %vm3340_vm1 }
 0x6da   : > { %v1327_v56 = vpop.permute.xlu0 %1326 }
 0x6db   : > { %v2984_v12 = vsel %vm3328_vm0, %v1325_v54, %v1327_v56  ;;  %v1333_v10 = vsel %vm3329_vm12, %v1327_v56, 0.0  ;;  %vm3341_vm0 = vnez %v3253_v24  ;;  %vm3342_vm12 = vmmov %vm3337_vm11 }
 0x6dc   : > { %1402 = vrot.lane.b32.xlu2 %v1333_v10, %s2372_s21  ;;  %1400 = vrot.lane.b32.xlu0 %v2984_v12, %s2372_s21  ;;  %v1335_v47 = vsel %vm2567_vm10, %v2984_v12, 0.0 }
 0x6dd   : > { %1422 = vrot.lane.b32.xlu1 %v2984_v12, %s2368_s4 }
 0x6e4   : > { %1340 = vrot.lane.b32.xlu2 %v2984_v12, %s2370_s30  ;;  %1338 = vrot.lane.b32.xlu0 %v1332_v55, %s2370_s30 }
 0x6e5   : > { %1388 = vrot.lane.b32.xlu1 %v2984_v12, %s3330_s2 }
 0x6ec   : > { %1350 = vrot.lane.b32.xlu2 %v1332_v55, %s3331_s28  ;;  %1342 = vrot.lane.b32.xlu0 %v1333_v10, %s2370_s30 }
 0x6f4   : > { %1354 = vrot.lane.b32.xlu2 %v1333_v10, %s3331_s28  ;;  %1352 = vrot.lane.b32.xlu0 %v2984_v12, %s3331_s28 }
 0x6fc   : > { %1366 = vrot.lane.b32.xlu2 %v1333_v10, %s2369_s29  ;;  %1364 = vrot.lane.b32.xlu0 %v2984_v12, %s2369_s29 }
 0x704   : > { %1376 = vrot.lane.b32.xlu2 %v2984_v12, %s2366_s27  ;;  %1374 = vrot.lane.b32.xlu0 %v1332_v55, %s2366_s27 }
 0x70c   : > { %1420 = vrot.lane.b32.xlu2 %v1332_v55, %s2368_s4  ;;  %1378 = vrot.lane.b32.xlu0 %v1333_v10, %s2366_s27 }
 0x714   : > { %1386 = vrot.lane.b32.xlu2 %v1332_v55, %s3330_s2  ;;  %1424 = vrot.lane.b32.xlu0 %v1333_v10, %s2368_s4 }
 0x718   : > { %v1399_v58 = vpop.permute.xlu2 %1398 }
 0x71c   : > { %1390 = vrot.lane.b32.xlu0 %v1333_v10, %s3330_s2 }
 0x730   : > { %v1363_v26 = vpop.permute.xlu1 %1362 }
 0x736   : > { %v1403_v45 = vpop.permute.xlu2 %1402 }
 0x73e   : > { %v1341_v46 = vpop.permute.xlu2 %1340 }
 0x746   : > { %v1351_v63 = vpop.permute.xlu2 %1350 }
 0x74e   : > { %v1401_v62 = vpop.permute.xlu0 %1400  ;;  %v1355_v1 = vpop.permute.xlu2 %1354 }
 0x74f   : > { %v1404_v61 = vsel %vm3334_vm6, %v1399_v58, %v1401_v62  ;;  %v1405_v5 = vsel %vm3338_vm14, %v1401_v62, %v1403_v45  ;;  %v1423_v40 = vpop.permute.xlu1 %1422 }
 0x750   : > { %v1408_v8 = vadd.f32 %v1404_v61, %v1334_v14  ;;  %v1409_v38 = vadd.f32 %v1405_v5, %v1335_v47 }
 0x756   : > { %v1339_v3 = vpop.permute.xlu0 %1338  ;;  %v1367_v60 = vpop.permute.xlu2 %1366 }
 0x757   : > { %v1344_v25 = vsel %vm3333_vm2, %v1339_v3, %v1341_v46  ;;  %v1389_v62 = vpop.permute.xlu1 %1388  ;;  %vm3347_vm2 = vmmov %vm3345_vm3 }
 0x758   : > { %v1348_v29 = vsel %vm2549_vm4, %v1344_v25, 0.0 }
 0x759   : > { %v1410_v7 = vadd.f32 %v1408_v8, %v1348_v29  ;;  %v1665_v29 = vld [vmem:[%s3211_s17] sm:$0xff]  ;;  %v1690_v8 = vpop.f32.mrf.mxu1 }
 0x75e   : > { %v1343_v16 = vpop.permute.xlu0 %1342  ;;  %v1377_v22 = vpop.permute.xlu2 %1376 }
 0x75f   : > { %v1345_v33 = vsel %vm3336_vm9, %v1341_v46, %v1343_v16 }
 0x760   : > { %v1349_v48 = vsel %vm3341_vm0, %v1345_v33, 0.0 }
 0x761   : > { %v1411_v55 = vadd.f32 %v1409_v38, %v1349_v48 }
 0x766   : > { %v1353_v20 = vpop.permute.xlu0 %1352  ;;  %v1421_v32 = vpop.permute.xlu2 %1420 }
 0x767   : > { %v1356_v28 = vsel %vm3335_vm13, %v1351_v63, %v1353_v20  ;;  %v1357_v41 = vsel %vm3339_vm15, %v1353_v20, %v1355_v1  ;;  %v1426_v63 = vsel %vm3344_vm5, %v1421_v32, %v1423_v40 }
 0x768   : > { %v1360_v30 = vsel %vm2563_vm7, %v1356_v28, 0.0  ;;  %v1361_v53 = vsel %vm2567_vm10, %v1357_v41, 0.0 }
 0x769   : > { %v1412_v39 = vadd.f32 %v1410_v7, %v1360_v30  ;;  %v1413_v10 = vadd.f32 %v1411_v55, %v1361_v53  ;;  %v1691_v30 = vadd.f32 %v1690_v8, %v1665_v29  ;;  %v1545_v55 = vld [vmem:[%s3205_s11] sm:$0xff] }
 0x76b   : > { %v1414_v18 = vadd.f32 %v1412_v39, %v2971_v43  ;;  %v1415_v31 = vadd.f32 %v1413_v10, %v2976_v17  ;;  %v2103_v7 = vmul.f32 -1.442695, %v1691_v30 }
 0x76d   : > { %2329 = vpow2.f32 %v2103_v7 }
 0x76e   : > { %v1365_v21 = vpop.permute.xlu0 %1364  ;;  %v1387_v58 = vpop.permute.xlu2 %1386 }
 0x76f   : > { %v1368_v4 = vsel %vm3337_vm11, %v1363_v26, %v1365_v21  ;;  %v1369_v12 = vsel %vm3342_vm12, %v1365_v21, %v1367_v60  ;;  %v1392_v6 = vsel %vm3345_vm3, %v1387_v58, %v1389_v62  ;;  %v917_v58 = vld [vmem:[%s3207_s13] sm:$0xff]  ;;  %vm3355_vm3 = vcmask 785408  }
 0x770   : > { %v1372_v50 = vsel %vm2549_vm4, %v1368_v4, 0.0  ;;  %v1373_v3 = vsel %vm3341_vm0, %v1369_v12, 0.0  ;;  %v1396_v13 = vsel %vm2549_vm4, %v1392_v6, 0.0 }
 0x771   : > { %v1416_v56 = vadd.f32 %v1414_v18, %v1372_v50  ;;  %v1417_v16 = vadd.f32 %v1415_v31, %v1373_v3 }
 0x773   : > { %v2330_v41 = vpop.eup %2329 }
 0x776   : > { %v1375_v27 = vpop.permute.xlu0 %1374 }
 0x777   : > { %v1380_v42 = vsel %vm3340_vm1, %v1375_v27, %v1377_v22  ;;  %vm3351_vm1 = vmmov %vm3347_vm2 }
 0x778   : > { %v1384_v54 = vsel %vm2563_vm7, %v1380_v42, 0.0  ;;  %vm3346_vm7 = vmmov %vm3344_vm5  ;;  %v1696_v42 = vadd.f32 1.0, %v2330_v41 }
 0x779   : > { %v1418_v57 = vadd.f32 %v1416_v56, %v1384_v54  ;;  %vm3352_vm12 = vmmov %vm3351_vm1 }
 0x77a   : > { %2331 = vrcp.f32 %v1696_v42  ;;  %vm1702_vm9 = vweird.f32 %v1696_v42  ;;  %v1708_v18 = vand.u32 2147483648, %v1696_v42  ;;  %v1706_v54 = vand.u32 2147483647, %v1696_v42 }
 0x77b   : > { %v1430_v0 = vadd.f32 %v1426_v63, %v1418_v57  ;;  %v1726_v57 = vld [vmem:[%s3213_s19] sm:$0x7] }
 0x77c   : > { %v1709_v56 = vor.u32 1.1754944e-38, %v1708_v18  ;;  %vm1707_vm15 = vcmp.eq.f32.partialorder %v1706_v54, 8.507059e+37 }
 0x77d   : > { %v1432_v19 = vadd.f32 %v1430_v0, %v1396_v13 }
 0x77e   : > { %v1379_v36 = vpop.permute.xlu0 %1378 }
 0x77f   : > { %v1381_v46 = vsel %vm3343_vm8, %v1377_v22, %v1379_v36  ;;  %v1434_v61 = vmul.f32 0.11111111, %v1432_v19  ;;  %vm3353_vm8 = vcmask 1043456  }
 0x780   : > { %v1385_v1 = vsel %vm2567_vm10, %v1381_v46, 0.0  ;;  %vm3348_vm10 = vcmask 138240   ;;  %v2332_v47 = vpop.eup %2331  ;;  %vm3354_vm5 = vmmov %vm3353_vm8 }
 0x781   : > { %v1419_v20 = vadd.f32 %v1417_v16, %v1385_v1  ;;  %v3065_v37 = vsub.f32 %v2971_v43, %v1434_v61  ;;  %vm3349_vm6 = vmmov %vm3348_vm10  ;;  %v1698_v48 = vmul.f32 %v2332_v47, %v1696_v42  ;;  %vm1703_vm11 = vweird.f32 %v2332_v47 }
 0x782   : > { %vm3350_vm13 = vmmov %vm3349_vm6 }
 0x783   : > { %v1699_v50 = vsub.f32 1.0, %v1698_v48  ;;  %vm1704_vm14 = vmor %vm1702_vm9, %vm1703_vm11  ;;  %vm3363_vm9 = vnez %v3264_v59  ;;  %vm3364_vm11 = vnez %v3266_v2 }
 0x785   : > { %v1700_v38 = vmul.f32 %v2332_v47, %v1699_v50 }
 0x786   : > { %v1425_v45 = vpop.permute.xlu0 %1424 }
 0x787   : > { %v1427_v11 = vsel %vm3346_vm7, %v1423_v40, %v1425_v45  ;;  %v1701_v53 = vadd.f32 %v2332_v47, %v1700_v38 }
 0x788   : > { %v1431_v21 = vadd.f32 %v1427_v11, %v1419_v20 }
 0x789   : > { %v1705_v10 = vsel %vm1704_vm14, %v2332_v47, %v1701_v53  ;;  %vm3365_vm14 = vcmask 1031168  }
 0x78a   : > { %v1710_v12 = vsel %vm1707_vm15, %v1709_v56, %v1705_v10  ;;  %vm3366_vm15 = vcmask 916480  }
 0x78e   : > { %v1391_v60 = vpop.permute.xlu0 %1390 }
 0x78f   : > { %v1393_v22 = vsel %vm3347_vm2, %v1389_v62, %v1391_v60  ;;  %vm3359_vm2 = vnez %v3260_v44 }
 0x790   : > { %v1397_v25 = vsel %vm3341_vm0, %v1393_v22, 0.0 }
 0x791   : > { %v1433_v26 = vadd.f32 %v1431_v21, %v1397_v25 }
 0x793   : > { %v1435_v27 = vmul.f32 0.11111111, %v1433_v26 }
 0x795   : > { %v3068_v28 = vsub.f32 %v2976_v17, %v1435_v27 }
 0x797   : > { %v2286_v14 = vpack.i.bf16 %v3068_v28, %v3065_v37 }
 0x799   : > { %2287 = vrot.lane.b32.xlu2 %v2286_v14, %s2365_s26  ;;  %s629_s26 = scalar_lea.vmem %s3214_s20, %s3377_s25 }
 0x7f3   : > { %v2288_v32 = vpop.permute.xlu2 %2287 }
 0x7f4   : > { %v2290_v33 = vunpack.i.h.bf16 %v2288_v32  ;;  %v2289_v39 = vunpack.i.l.bf16 %v2288_v32 }
 0x7f6   : > { %v1449_v4 = vsel %vm3348_vm10, %v2290_v33, 0.0  ;;  %v3078_v5 = vsel %vm3349_vm6, %v2289_v39, %v2290_v33  ;;  %v3081_v40 = vsel %vm3350_vm13, 0.0, %v2289_v39  ;;  %vm3360_vm10 = vnez %v3262_v49 }
 0x7f7   : > { %1506 = vrot.lane.b32.xlu0 %v1449_v4, %s3330_s2  ;;  %v2296_v36 = vpack.i.bf16 %v3078_v5, %v3081_v40  ;;  %vm3361_vm6 = vcmask 900096  }
 0x7f8   : > { %vm3362_vm13 = vmmov %vm3361_vm6 }
 0x7f9   : > { %2297 = vrot.lane.b32.xlu2 %v2296_v36, %s2366_s27  ;;  %2292 = vrot.lane.b32.xlu1 %v2296_v36, %s3330_s2 }
 0x7ff   : > { %2302 = vrot.lane.b32.xlu0 %v2296_v36, %s2368_s4 }
 0x801   : > { %1528 = vrot.lane.b32.xlu2 %v1449_v4, %s2368_s4  ;;  %1494 = vrot.lane.b32.xlu1 %v1449_v4, %s2366_s27 }
 0x807   : > { %1482 = vrot.lane.b32.xlu0 %v1449_v4, %s2369_s29 }
 0x809   : > { %2312 = vrot.lane.b32.xlu2 %v2296_v36, %s2370_s30  ;;  %2307 = vrot.lane.b32.xlu1 %v2296_v36, %s2369_s29 }
 0x80f   : > { %2317 = vrot.lane.b32.xlu0 %v2296_v36, %s3331_s28 }
 0x811   : > { %1470 = vrot.lane.b32.xlu2 %v1449_v4, %s3331_s28  ;;  %1458 = vrot.lane.b32.xlu1 %v1449_v4, %s2370_s30 }
 0x817   : > { %1518 = vrot.lane.b32.xlu0 %v1449_v4, %s2372_s21 }
 0x819   : > { %1548 = vperm.xlu2 %2220, %v1545_v55   ;;  %2322 = vrot.lane.b32.xlu1 %v2296_v36, %s2372_s21 }
 0x81f   : > { %1714 = vperm.xlu0 %2179, %v1710_v12  }
 0x821   : > { %1729 = vperm.xlu2 %2220, %v1726_v57   ;;  %920 = vperm.xlu1 %2326, %v917_v58  }
 0x853   : > { %v2298_v45 = vpop.permute.xlu2 %2297 }
 0x854   : > { %v2300_v13 = vunpack.i.h.bf16 %v2298_v45  ;;  %v2299_v11 = vunpack.i.l.bf16 %v2298_v45  ;;  %v1723_v45 = vpack.c.bf16 %v2657_v34, %v2657_v34 }
 0x856   : > { %v1496_v23 = vsel %vm3355_vm3, %v2299_v11, %v2300_v13 }
 0x85b   : > { %v1529_v0 = vpop.permute.xlu2 %1528 }
 0x863   : > { %v2313_v30 = vpop.permute.xlu2 %2312 }
 0x864   : > { %v2315_v47 = vunpack.i.h.bf16 %v2313_v30  ;;  %v2314_v48 = vunpack.i.l.bf16 %v2313_v30 }
 0x866   : > { %v1460_v55 = vsel %vm3365_vm14, %v2314_v48, %v2315_v47 }
 0x869   : > { %v1507_v46 = vpop.permute.xlu0 %1506 }
 0x86b   : > { %v2293_v62 = vpop.permute.xlu1 %2292  ;;  %v1471_v53 = vpop.permute.xlu2 %1470 }
 0x86c   : > { %v2295_v63 = vunpack.i.h.bf16 %v2293_v62  ;;  %v2294_v3 = vunpack.i.l.bf16 %v2293_v62 }
 0x86e   : > { %v1509_v6 = vsel %vm3351_vm1, %v2295_v63, %v1507_v46  ;;  %v1508_v31 = vsel %vm3352_vm12, %v2294_v3, %v2295_v63  ;;  %vm3367_vm1 = vmmov %vm3366_vm15  ;;  %v1724_v46 = vpack.c.bf16 %v2659_v35, %v2659_v35 }
 0x86f   : > { %v1512_v1 = vsel %vm2549_vm4, %v1508_v31, 0.0  ;;  %v1513_v16 = vsel %vm3341_vm0, %v1509_v6, 0.0  ;;  %vm3356_vm4 = vmmov %vm3346_vm7  ;;  %v1544_v31 = vld [vmem:[%s3204_s10] sm:$0xf] }
 0x870   : > { %v1542_v19 = vpack.c.bf16 %v1512_v1, %v1512_v1  ;;  %v1543_v20 = vpack.c.bf16 %v1513_v16, %v1513_v16  ;;  %vm3357_vm7 = vmmov %vm3356_vm4 }
 0x871   : > { %v2303_v60 = vpop.permute.xlu0 %2302  ;;  %vm3358_vm0 = vmmov %vm3355_vm3  ;;  %vm3371_vm3 = vcmask 1039360  }
 0x872   : > { %v2305_v21 = vunpack.i.h.bf16 %v2303_v60  ;;  %v2304_v22 = vunpack.i.l.bf16 %v2303_v60  ;;  %v1555_v25 = vsel %vm3353_vm8, %v1542_v19, 0  ;;  %v1558_v26 = vsel %vm3354_vm5, %v1543_v20, 0  ;;  %vm3368_vm12 = vmmov %vm3365_vm14 }
 0x873   : > { %v1495_v61 = vpop.permute.xlu1 %1494  ;;  %1563 = vmatpush.bf16.msra.mxu2 %v1555_v25  ;;  %1576 = vmatpush.bf16.msra.mxu3 %v1558_v26  ;;  %vm3369_vm8 = vnez %v3268_v9  ;;  %vm3370_vm5 = vnez %v3270_v15 }
 0x874   : > { %v1530_v27 = vsel %vm3356_vm4, %v2304_v22, %v2305_v21  ;;  %v1531_v24 = vsel %vm3357_vm7, %v2305_v21, %v1529_v0  ;;  %v1497_v14 = vsel %vm3358_vm0, %v2300_v13, %v1495_v61  ;;  %vm3372_vm4 = vmmov %vm3371_vm3  ;;  %vm3373_vm7 = vcmask 1043456  }
 0x875   : > { %v2073_v29 = vpack.c.bf16 %v1530_v27, %v1496_v23  ;;  %v2086_v8 = vpack.c.bf16 %v1531_v24, %v1497_v14  ;;  %v1737_v15 = vsel %vm3373_vm7, %v1723_v45, 0  ;;  %vm3374_vm0 = vmmov %vm3373_vm7 }
 0x876   : > { %v1740_v6 = vsel %vm3374_vm0, %v1724_v46, 0 }
 0x877   : > { %2074 = vmatpush.bf16.msk.msra.mxu2 %vm3359_vm2, %v2073_v29  ;;  %2087 = vmatpush.bf16.msk.msra.mxu3 %vm3360_vm10, %v2086_v8 }
 0x879   : > { %v1483_v7 = vpop.permute.xlu0 %1482 }
 0x87b   : > { %v2308_v32 = vpop.permute.xlu1 %2307 }
 0x87c   : > { %v2310_v33 = vunpack.i.h.bf16 %v2308_v32  ;;  %v2309_v39 = vunpack.i.l.bf16 %v2308_v32 }
 0x87e   : > { %v1485_v4 = vsel %vm3361_vm6, %v2310_v33, %v1483_v7  ;;  %v1484_v36 = vsel %vm3362_vm13, %v2309_v39, %v2310_v33  ;;  %vm3375_vm6 = vcmask 588800  }
 0x87f   : > { %v2089_v41 = vpack.c.bf16 %v1485_v4, %v3068_v28  ;;  %v2076_v42 = vpack.c.bf16 %v1484_v36, %v3065_v37  ;;  %vm3376_vm13 = vmmov %vm3375_vm6 }
 0x881   : > { %v2318_v50 = vpop.permute.xlu0 %2317  ;;  %2077 = vmatpush.bf16.msk.msra.mxu2 %vm3363_vm9, %v2076_v42  ;;  %2090 = vmatpush.bf16.msk.msra.mxu3 %vm3364_vm11, %v2089_v41 }
 0x882   : > { %v2320_v38 = vunpack.i.h.bf16 %v2318_v50  ;;  %v2319_v18 = vunpack.i.l.bf16 %v2318_v50 }
 0x883   : > { %v1459_v54 = vpop.permute.xlu1 %1458 }
 0x884   : > { %v1472_v56 = vsel %vm3366_vm15, %v2319_v18, %v2320_v38  ;;  %v1473_v28 = vsel %vm3367_vm1, %v2320_v38, %v1471_v53  ;;  %v1461_v37 = vsel %vm3368_vm12, %v2315_v47, %v1459_v54 }
 0x885   : > { %v2079_v10 = vpack.c.bf16 %v1472_v56, %v1460_v55  ;;  %v2092_v12 = vpack.c.bf16 %v1473_v28, %v1461_v37 }
 0x887   : > { %2080 = vmatpush.bf16.msk.msra.mxu2 %vm3369_vm8, %v2079_v10  ;;  %2093 = vmatpush.bf16.msk.msra.mxu3 %vm3370_vm5, %v2092_v12  ;;  %v1725_v10 = vld [vmem:[%s3212_s18] sm:$0x3]  ;;  %vm1732_vm8 = vcmask 195584  }
 0x889   : > { %v1519_v58 = vpop.permute.xlu0 %1518 }
 0x88b   : > { %v2323_v59 = vpop.permute.xlu1 %2322 }
 0x88c   : > { %v2325_v2 = vunpack.i.h.bf16 %v2323_v59  ;;  %v2324_v57 = vunpack.i.l.bf16 %v2323_v59 }
 0x88e   : > { %v1521_v62 = vsel %vm3371_vm3, %v2325_v2, %v1519_v58  ;;  %v1520_v63 = vsel %vm3372_vm4, %v2324_v57, %v2325_v2 }
 0x88f   : > { %v2095_v9 = vpack.c.bf16 %v1521_v62, %v3078_v5  ;;  %v2082_v3 = vpack.c.bf16 %v1520_v63, %v3081_v40  ;;  %v1549_v5 = vpop.permute.xlu2 %1548 }
 0x891   : > { %2083 = vmatpush.bf16.msk.msra.mxu2 %vm3359_vm2, %v2082_v3  ;;  %2096 = vmatpush.bf16.msk.msra.mxu3 %vm3360_vm10, %v2095_v9  ;;  %v1715_v33 = vpop.permute.xlu0 %1714 }
 0x893   : > { %v921_v25 = vpop.permute.xlu1 %920 }
 0x894   : > { %2084 = vmatmul.msk.bf16.vlgmr.msra.gmra.mxu2 %vm3375_vm6, %v1544_v31  ;;  %2097 = vmatmul.msk.bf16.vlgmr.msra.gmra.mxu3 %vm3376_vm13, %v1544_v31  ;;  %v942_v27 = vadd.f32 %v2858_v51, %v921_v25  ;;  %v955_v14 = vadd.f32 %v2860_v52, %v921_v25 }
 0x895   : > { %1748 = vmatpush.bf16.msrb.mxu2 %v1737_v15  ;;  %1761 = vmatpush.bf16.msrb.mxu3 %v1740_v6 }
 0x896   : > { %v1717_v36 = vmul.f32 %v1715_v33, %v942_v27  ;;  %v1718_v42 = vmul.f32 %v1715_v33, %v955_v14 }
 0x898   : > { %v3162_v18 = vadd.f32 %v1717_v36, %v2657_v34  ;;  %v3168_v55 = vadd.f32 %v1718_v42, %v2659_v35 }
 0x917   : > { %v1569_v44 = vpop.f32.mrf.mxu2  ;;  %v1582_v40 = vpop.f32.mrf.mxu3 }
 0x918   : > { %v1570_v0 = vadd.f32 %v1569_v44, %v1549_v5  ;;  %v1583_v49 = vadd.f32 %v1582_v40, %v1549_v5 }
 0x91a   : > { %v2098_v1 = vmul.f32 -1.442695, %v1570_v0  ;;  %v2099_v16 = vmul.f32 -1.442695, %v1583_v49 }
 0x91c   : > { %2333 = vpow2.f32 %v2098_v1 }
 0x91d   : > { %2335 = vpow2.f32 %v2099_v16 }
 0x91f   : > { %v1571_v13 = vpop.f32.mrf.mxu2  ;;  %v1584_v11 = vpop.f32.mrf.mxu3 }
 0x922   : > { %v2334_v19 = vpop.eup %2333 }
 0x923   : > { %v2336_v20 = vpop.eup %2335  ;;  %v1592_v60 = vadd.f32 1.0, %v2334_v19 }
 0x924   : > { %v1593_v21 = vadd.f32 1.0, %v2336_v20 }
 0x925   : > { %2337 = vrcp.f32 %v1592_v60  ;;  %v1605_v8 = vand.u32 2147483648, %v1592_v60  ;;  %v1603_v7 = vand.u32 2147483647, %v1592_v60  ;;  %vm1599_vm9 = vweird.f32 %v1592_v60 }
 0x926   : > { %2339 = vrcp.f32 %v1593_v21  ;;  %v1620_v32 = vand.u32 2147483648, %v1593_v21  ;;  %v1618_v4 = vand.u32 2147483647, %v1593_v21  ;;  %vm1614_vm14 = vweird.f32 %v1593_v21 }
 0x927   : > { %v1606_v47 = vor.u32 1.1754944e-38, %v1605_v8  ;;  %vm1604_vm15 = vcmp.eq.f32.partialorder %v1603_v7, 8.507059e+37 }
 0x928   : > { %v1621_v52 = vor.u32 1.1754944e-38, %v1620_v32  ;;  %vm1619_vm12 = vcmp.eq.f32.partialorder %v1618_v4, 8.507059e+37 }
 0x92b   : > { %v2338_v22 = vpop.eup %2337 }
 0x92c   : > { %v2340_v26 = vpop.eup %2339  ;;  %v1595_v61 = vmul.f32 %v2338_v22, %v1592_v60  ;;  %vm1600_vm2 = vweird.f32 %v2338_v22 }
 0x92d   : > { %v1610_v23 = vmul.f32 %v2340_v26, %v1593_v21  ;;  %vm1615_vm10 = vweird.f32 %v2340_v26  ;;  %vm1601_vm11 = vmor %vm1599_vm9, %vm1600_vm2 }
 0x92e   : > { %v1596_v24 = vsub.f32 1.0, %v1595_v61  ;;  %vm1616_vm1 = vmor %vm1614_vm14, %vm1615_vm10 }
 0x92f   : > { %v1611_v29 = vsub.f32 1.0, %v1610_v23 }
 0x930   : > { %v1597_v30 = vmul.f32 %v2338_v22, %v1596_v24 }
 0x931   : > { %v1612_v39 = vmul.f32 %v2340_v26, %v1611_v29 }
 0x932   : > { %v1598_v41 = vadd.f32 %v2338_v22, %v1597_v30 }
 0x933   : > { %v1613_v51 = vadd.f32 %v2340_v26, %v1612_v39 }
 0x934   : > { %v1602_v48 = vsel %vm1601_vm11, %v2338_v22, %v1598_v41 }
 0x935   : > { %v1607_v50 = vsel %vm1604_vm15, %v1606_v47, %v1602_v48  ;;  %v1617_v38 = vsel %vm1616_vm1, %v2340_v26, %v1613_v51 }
 0x936   : > { %v3165_v53 = vmul.f32 %v1607_v50, %v2971_v43  ;;  %v1622_v54 = vsel %vm1619_vm12, %v1621_v52, %v1617_v38  ;;  %v1730_v43 = vpop.permute.xlu2 %1729 }
 0x937   : > { %v3171_v56 = vmul.f32 %v1622_v54, %v2976_v17 }
 0x938   : > { %v1721_v28 = vpack.c.bf16 %v3162_v18, %v3165_v53 }
 0x939   : > { %v1722_v37 = vpack.c.bf16 %v3168_v55, %v3171_v56 }
 0x93a   : > { %1749 = vmatpush.bf16.msrb.mxu2 %v1721_v28 }
 0x93b   : > { %1762 = vmatpush.bf16.msrb.mxu3 %v1722_v37 }
 0x93d   : > { %2104 = vmatmul.msk.bf16.vlgmr.msrb.gmra.mxu2 %vm1732_vm8, %v1725_v10 }
 0x93e   : > { %2105 = vmatmul.msk.bf16.vlgmr.msrb.gmra.mxu3 %vm1732_vm8, %v1725_v10 }
 0x9c0   : > { %v1751_v12 = vpop.f32.mrf.mxu2 }
 0x9c1   : > { %v1752_v59 = vadd.f32 %v1751_v12, %v1730_v43  ;;  %v1764_v17 = vpop.f32.mrf.mxu3 }
 0x9c2   : > { %v1765_v2 = vadd.f32 %v1764_v17, %v1730_v43 }
 0x9c3   : > { %v1770_v57 = vrot.slane %v1752_v59, 1  ;;  %v1776_v46 = vrot.slane %v1752_v59, 2 }
 0x9c4   : > { %v1771_v58 = vrot.slane %v1765_v2, 1  ;;  %v1777_v63 = vrot.slane %v1765_v2, 2 }
 0x9c5   : > { %v1774_v45 = vmax.f32 %v1752_v59, %v1770_v57 }
 0x9c6   : > { %v1775_v62 = vmax.f32 %v1765_v2, %v1771_v58 }
 0x9c7   : > { %v1780_v9 = vmax.f32 %v1774_v45, %v1776_v46 }
 0x9c8   : > { %v1781_v3 = vmax.f32 %v1775_v62, %v1777_v63  ;;  %v1753_v15 = vpop.f32.mrf.mxu2 }
 0x9c9   : > { %v1782_v6 = vsub.f32 %v1752_v59, %v1780_v9  ;;  %v1790_v31 = vrot.slane %v1780_v9, 7  ;;  %v1800_v5 = vrot.slane %v1780_v9, 6  ;;  %v1766_v44 = vpop.f32.mrf.mxu3 }
 0x9ca   : > { %v1791_v40 = vrot.slane %v1781_v3, 7  ;;  %v1801_v0 = vrot.slane %v1781_v3, 6  ;;  %v1783_v13 = vsub.f32 %v1765_v2, %v1781_v3 }
 0x9cb   : > { %v1784_v49 = vmul.f32 1.442695, %v1782_v6  ;;  %v1794_v1 = vsub.f32 %v1752_v59, %v1790_v31  ;;  %v1804_v16 = vsub.f32 %v1752_v59, %v1800_v5 }
 0x9cc   : > { %v1795_v11 = vsub.f32 %v1765_v2, %v1791_v40  ;;  %v1805_v19 = vsub.f32 %v1765_v2, %v1801_v0  ;;  %v1786_v25 = vmul.f32 1.442695, %v1783_v13 }
 0x9cd   : > { %v1796_v20 = vmul.f32 1.442695, %v1794_v1  ;;  %v1806_v60 = vmul.f32 1.442695, %v1804_v16  ;;  %2341 = vpow2.f32 %v1784_v49 }
 0x9ce   : > { %v1798_v21 = vmul.f32 1.442695, %v1795_v11  ;;  %v1808_v22 = vmul.f32 1.442695, %v1805_v19 }
 0x9cf   : > { %2343 = vpow2.f32 %v1796_v20 }
 0x9d0   : > { %2345 = vpow2.f32 %v1806_v60 }
 0x9d1   : > { %2347 = vpow2.f32 %v1798_v21 }
 0x9d2   : > { %2349 = vpow2.f32 %v1808_v22 }
 0x9d3   : > { %2351 = vpow2.f32 %v1786_v25  ;;  %v2342_v26 = vpop.eup %2341 }
 0x9d4   : > { %v1856_v42 = vperm.slane %v2342_v26, 0 }
 0x9d5   : > { %v2344_v61 = vpop.eup %2343 }
 0x9d6   : > { %v2346_v23 = vpop.eup %2345  ;;  %v1812_v27 = vrot.slane %v2344_v61, 1  ;;  %v1860_v36 = vperm.slane %v2344_v61, 1  ;;  %v1858_v28 = vmul.f32 %v1856_v42, %v3165_v53 }
 0x9d7   : > { %v2348_v24 = vpop.eup %2347  ;;  %v1820_v8 = vrot.slane %v2346_v23, 2  ;;  %v1866_v12 = vperm.slane %v2346_v23, 2 }
 0x9d8   : > { %v2350_v14 = vpop.eup %2349  ;;  %v1816_v29 = vadd.f32 %v2342_v26, %v1812_v27  ;;  %v1813_v30 = vrot.slane %v2348_v24, 1  ;;  %v1861_v48 = vperm.slane %v2348_v24, 1  ;;  %v1862_v38 = vmul.f32 %v1860_v36, %v3162_v18 }
 0x9d9   : > { %v2352_v7 = vpop.eup %2351  ;;  %v1821_v39 = vrot.slane %v2350_v14, 2  ;;  %v1867_v57 = vperm.slane %v2350_v14, 2  ;;  %v1868_v9 = vmul.f32 %v1866_v12, %v2657_v34 }
 0x9da   : > { %v1824_v32 = vadd.f32 %v1820_v8, %v1816_v29  ;;  %v1817_v33 = vadd.f32 %v2352_v7, %v1813_v30  ;;  %v1857_v51 = vperm.slane %v2352_v7, 0  ;;  %v1863_v2 = vmul.f32 %v1861_v48, %v3168_v55 }
 0x9db   : > { %v1864_v45 = vadd.f32 %v1862_v38, %v1858_v28  ;;  %v1869_v44 = vmul.f32 %v1867_v57, %v2659_v35 }
 0x9dc   : > { %2353 = vrcp.f32 %v1824_v32  ;;  %v1825_v4 = vadd.f32 %v1821_v39, %v1817_v33  ;;  %v1837_v54 = vand.u32 2147483648, %v1824_v32  ;;  %v1835_v43 = vand.u32 2147483647, %v1824_v32 }
 0x9dd   : > { %v1859_v17 = vmul.f32 %v1857_v51, %v3171_v56  ;;  %vm1831_vm3 = vweird.f32 %v1824_v32  ;;  %v1870_v55 = vadd.f32 %v1868_v9, %v1864_v45 }
 0x9de   : > { %2355 = vrcp.f32 %v1825_v4  ;;  %v1852_v46 = vand.u32 2147483648, %v1825_v4  ;;  %v1838_v18 = vor.u32 1.1754944e-38, %v1837_v54  ;;  %v1850_v53 = vand.u32 2147483647, %v1825_v4 }
 0x9df   : > { %vm1836_vm0 = vcmp.eq.f32.partialorder %v1835_v43, 8.507059e+37  ;;  %vm1846_vm6 = vweird.f32 %v1825_v4  ;;  %v1865_v56 = vadd.f32 %v1863_v2, %v1859_v17 }
 0x9e0   : > { %v1853_v31 = vor.u32 1.1754944e-38, %v1852_v46  ;;  %vm1851_vm2 = vcmp.eq.f32.partialorder %v1850_v53, 8.507059e+37 }
 0x9e1   : > { %v1871_v34 = vadd.f32 %v1869_v44, %v1865_v56 }
 0x9e2   : > { %v2354_v41 = vpop.eup %2353 }
 0x9e3   : > { %v1827_v47 = vmul.f32 %v2354_v41, %v1824_v32  ;;  %vm1832_vm5 = vweird.f32 %v2354_v41 }
 0x9e4   : > { %v2356_v52 = vpop.eup %2355  ;;  %vm1833_vm4 = vmor %vm1831_vm3, %vm1832_vm5 }
 0x9e5   : > { %v1828_v50 = vsub.f32 1.0, %v1827_v47  ;;  %v1842_v37 = vmul.f32 %v2356_v52, %v1825_v4  ;;  %vm1847_vm7 = vweird.f32 %v2356_v52 }
 0x9e6   : > { %vm1848_vm13 = vmor %vm1846_vm6, %vm1847_vm7 }
 0x9e7   : > { %v1829_v10 = vmul.f32 %v2354_v41, %v1828_v50  ;;  %v1843_v59 = vsub.f32 1.0, %v1842_v37 }
 0x9e9   : > { %v1830_v58 = vadd.f32 %v2354_v41, %v1829_v10  ;;  %v1844_v62 = vmul.f32 %v2356_v52, %v1843_v59 }
 0x9eb   : > { %v1834_v63 = vsel %vm1833_vm4, %v2354_v41, %v1830_v58  ;;  %v1845_v15 = vadd.f32 %v2356_v52, %v1844_v62 }
 0x9ec   : > { %v1839_v3 = vsel %vm1836_vm0, %v1838_v18, %v1834_v63 }
 0x9ed   : > { %v1872_v6 = vperm.slane %v1839_v3, 0  ;;  %v1849_v5 = vsel %vm1848_vm13, %v2356_v52, %v1845_v15 }
 0x9ee   : > { %v1854_v0 = vsel %vm1851_vm2, %v1853_v31, %v1849_v5 }
 0x9ef   : > { %v1874_v40 = vmul.f32 %v1872_v6, %v1870_v55  ;;  %v1873_v49 = vperm.slane %v1854_v0, 0 }
 0x9f1   : > { %1876 = vst [vmem:[%s629_s26] sm:$0xff] %v1874_v40  ;;  %v1875_v1 = vmul.f32 %v1873_v49, %v1871_v34 }
 0x9f3   : > { %1877 = vst [vmem:[%s629_s26 + $0x8] sm:$0xff] %v1875_v1 }
 0x9f4 PF: > { %s30_s1 = sadd.s32 1, %s2363_s1  }
 0x9f5   : > { %p27_p4 = scmp.ge.s32.totalorder %s30_s1, 4  }
 0x9f7   :  { %29 = sbr.rel (!%p27_p4) target bundleno = 6 (0x6), region = 130 }

</bundles_post_ra>
